<compile_context>
chip_gen: v6e
topology: v6e:2x2x1
jax: 0.10.0
libtpu: 0.0.40
codegen_flags: <defaults>
</compile_context>

<pallas_src>
import jax
import jax.numpy as jnp
from jax import lax
from jax.experimental import pallas as pl
from jax.experimental.pallas import tpu as pltpu

HIDDEN = 32  # module's hidden_size


def _round_up(a, b):
    return (a + b - 1) // b * b


def _make_kernel(BB, H, W, C):
    M2 = BB * H          # rows per grid step, (h, b) ordered, b innermost
    WC = W * C           # lanes per row: lane = w*C + c

    def kernel(x_ref, w1_ref, b1_ref, w2_ref, b2_ref, w3_ref, b3_ref,
               wm_ref, bm_ref, out_ref, xpad_ref):
        # x_ref    : (1, M2, WC)   bf16  input activations
        # wN_ref   : (3, WC, WC)   bf16  per-dy conv matrices (dx baked in)
        # bN_ref   : (1, WC)       f32   conv bias tiled over w
        # wm_ref   : (W, WC)       bf16  head weight (block-diag Linear(32,1))
        # bm_ref   : (1, 1)        f32   head bias
        # out_ref  : (1, W, M2)    f32   head output, lane-dense
        # xpad_ref : (M2+2BB, WC)  bf16  zero-haloed activation scratch

        # Re-zero only the halo rows each step (cheap; keeps "parallel" safe).
        xpad_ref[0:BB, :] = jnp.zeros((BB, WC), jnp.bfloat16)
        xpad_ref[BB + M2:M2 + 2 * BB, :] = jnp.zeros((BB, WC), jnp.bfloat16)

        def conv3x3_relu(x_bf, w_ref, b_ref):
            # x_bf: (M2, WC) bf16. Store once; the dh = +-1 shifts become
            # +-BB-row slices of the haloed scratch -> all sublane aligned,
            # and image boundaries get zeros from the halo (b is innermost,
            # so no cross-image contamination).
            xpad_ref[BB:BB + M2, :] = x_bf
            acc = jnp.dot(x_bf, w_ref[1],                              # dy = 0
                          preferred_element_type=jnp.float32)
            acc += jnp.dot(xpad_ref[0:M2, :], w_ref[0],                # dy = -1
                           preferred_element_type=jnp.float32)
            acc += jnp.dot(xpad_ref[2 * BB:2 * BB + M2, :], w_ref[2],  # dy = +1
                           preferred_element_type=jnp.float32)
            # Bias + ReLU in f32 (VPU); cast to bf16 only for the next MXU feed.
            return jnp.maximum(acc + b_ref[...], 0.0).astype(jnp.bfloat16)

        h = x_ref[0]                                          # (M2, WC) bf16
        h = conv3x3_relu(h, w1_ref, b1_ref)
        h = conv3x3_relu(h, w2_ref, b2_ref)
        h = conv3x3_relu(h, w3_ref, b3_ref)

        # Head: Linear(32, 1). Contract the WC axis of BOTH operands so the
        # MXU consumes h directly (no h.T relayout) and the result is a
        # lane-dense (W, M2) tile.
        y = lax.dot_general(wm_ref[...], h, (((1,), (1,)), ((), ())),
                            preferred_element_type=jnp.float32)
        out_ref[0] = y + bm_ref[...]

    return kernel


def _conv_to_shift_mats(w_hwio, W):
    """HWIO (3,3,Cin,Cout) conv weight -> (3, W*C, W*C) bf16 per-dy matrices.

    A_dy[(w+dx)*C + ci, w*C + co] = w_hwio[dy+1, dx+1, ci, co]; the dx shift
    and its SAME zero padding live entirely inside A_dy.
    """
    mats = []
    for dy in range(3):
        A = sum(jnp.kron(jnp.eye(W, k=-dx, dtype=jnp.float32),
                         w_hwio[dy, dx + 1].astype(jnp.float32))
                for dx in (-1, 0, 1))
        mats.append(A)
    return jnp.stack(mats).astype(jnp.bfloat16)


def cnn_arch_1_forward(x, p, params, block_b=128):
    C = HIDDEN
    # Embedding glue (tiny gathers) stays in plain JAX.
    emb_x = params["grid_emb"][(x + 1).astype(jnp.int32)]          # (B,H,W,C)
    emb_p = params["player_emb"][p.astype(jnp.int32)]              # (B,C)
    xin = (emb_x + emb_p[:, None, None, :]).astype(jnp.float32)    # (B,H,W,C)
    B, H, W, _ = xin.shape
    WC = W * C

    # Images per grid step: multiple of 16 so (a) the +-BB row shifts are
    # sublane aligned and (b) M2 = BB*H is a multiple of 128 (lane-dense out).
    BB = min(_round_up(block_b, 16), _round_up(B, 16))
    nblk = pl.cdiv(B, BB)
    Bpad = nblk * BB
    if Bpad != B:
        xin = jnp.pad(xin, ((0, Bpad - B), (0, 0), (0, 0), (0, 0)))
    M2 = BB * H

    # (h, b)-ordered rows, batch innermost; bf16 MXU feed.
    x_rows = (xin.reshape(nblk, BB, H, WC).transpose(0, 2, 1, 3)
                 .reshape(nblk, M2, WC).astype(jnp.bfloat16))

    # Wrapper-side weight plumbing (traced once, free-ish XLA work).
    w1 = _conv_to_shift_mats(params["w1"], W)
    w2 = _conv_to_shift_mats(params["w2"], W)
    w3 = _conv_to_shift_mats(params["w3"], W)
    b1 = jnp.tile(params["b1"], (1, W))                            # (1, WC) f32
    b2 = jnp.tile(params["b2"], (1, W))
    b3 = jnp.tile(params["b3"], (1, W))
    wm = jnp.kron(jnp.eye(W, dtype=jnp.float32),
                  params["wm"]).astype(jnp.bfloat16)               # (W, WC)
    bm = params["bm"]                                              # (1, 1) f32

    out = pl.pallas_call(
        _make_kernel(BB, H, W, C),
        out_shape=jax.ShapeDtypeStruct((nblk, W, M2), jnp.float32),
        grid=(nblk,),
        in_specs=[
            pl.BlockSpec((1, M2, WC), lambda i: (i, 0, 0)),
            pl.BlockSpec((3, WC, WC), lambda i: (0, 0, 0)),
            pl.BlockSpec((1, WC), lambda i: (0, 0)),
            pl.BlockSpec((3, WC, WC), lambda i: (0, 0, 0)),
            pl.BlockSpec((1, WC), lambda i: (0, 0)),
            pl.BlockSpec((3, WC, WC), lambda i: (0, 0, 0)),
            pl.BlockSpec((1, WC), lambda i: (0, 0)),
            pl.BlockSpec((W, WC), lambda i: (0, 0)),
            pl.BlockSpec((1, 1), lambda i: (0, 0)),
        ],
        out_specs=pl.BlockSpec((1, W, M2), lambda i: (i, 0, 0)),
        scratch_shapes=[pltpu.VMEM((M2 + 2 * BB, WC), jnp.bfloat16)],
        compiler_params=pltpu.CompilerParams(
            dimension_semantics=("parallel",)),
    )(x_rows, w1, b1, w2, b2, w3, b3, wm, bm)

    # (nblk, W, M2) -> (B, H, W)
    return (out.reshape(nblk, W, H, BB).transpose(0, 3, 2, 1)
               .reshape(Bpad, H, W))[:B]


def init_params(key):
    C = HIDDEN
    ks = jax.random.split(key, 10)

    def unif(k, shape, fan_in):
        bound = 1.0 / float(fan_in) ** 0.5
        return jax.random.uniform(k, shape, jnp.float32, -bound, bound)

    return {
        "grid_emb": jax.random.normal(ks[0], (3, C), jnp.float32),
        "player_emb": jax.random.normal(ks[1], (2, C), jnp.float32),
        "w1": unif(ks[2], (3, 3, C, C), 9 * C),   # HWIO
        "b1": unif(ks[3], (1, C), 9 * C),
        "w2": unif(ks[4], (3, 3, C, C), 9 * C),
        "b2": unif(ks[5], (1, C), 9 * C),
        "w3": unif(ks[6], (3, 3, C, C), 9 * C),
        "b3": unif(ks[7], (1, C), 9 * C),
        "wm": unif(ks[8], (1, C), C),             # Linear(32,1).weight -> (1,32)
        "bm": unif(ks[9], (1, 1), C),
    }


def reference_forward(x, p, params):
    # Pure-JAX reference matching the PyTorch forward semantics.
    C = HIDDEN
    emb_x = params["grid_emb"][(x + 1).astype(jnp.int32)]
    emb_p = params["player_emb"][p.astype(jnp.int32)]
    h = (emb_x + emb_p[:, None, None, :]).astype(jnp.float32)
    for wk, bk in (("w1", "b1"), ("w2", "b2"), ("w3", "b3")):
        h = lax.conv_general_dilated(
            h, params[wk], window_strides=(1, 1), padding="SAME",
            dimension_numbers=("NHWC", "HWIO", "NHWC"))
        h = jax.nn.relu(h + params[bk].reshape(1, 1, 1, C))
    y = jnp.einsum("bhwc,oc->bhwo", h, params["wm"]) + params["bm"][0, 0]
    return jnp.squeeze(y, axis=-1)


if __name__ == "__main__":
    key = jax.random.PRNGKey(0)
    kparam, kx, kp = jax.random.split(key, 3)
    params = init_params(kparam)

    B, H, W = 2, 8, 8
    x = jax.random.randint(kx, (B, H, W), -1, 2, dtype=jnp.int32)  # board {-1,0,1}
    p = jax.random.randint(kp, (B,), 0, 2, dtype=jnp.int32)        # player {0,1}

    out = jax.block_until_ready(cnn_arch_1_forward(x, p, params))
    ref = reference_forward(x, p, params)

    assert out.shape == (B, H, W), out.shape
    max_err = float(jnp.max(jnp.abs(out - ref)))
    # Kernel feeds the MXU bf16 (same rounding as DEFAULT precision) with f32
    # accumulate; tolerance covers that.
    assert jnp.allclose(out, ref, atol=2e-2, rtol=2e-2), max_err
    print("KERNEL_OK")
</pallas_src>

<mosaic_0001>
module attributes {stable_mosaic.version = 11 : i64} {
  func.func @kernel(%arg0: i32, %arg1: memref<1x128x256xbf16, #tpu.memory_space<vmem>>, %arg2: memref<3x256x256xbf16, #tpu.memory_space<vmem>>, %arg3: memref<1x256xf32, #tpu.memory_space<vmem>>, %arg4: memref<3x256x256xbf16, #tpu.memory_space<vmem>>, %arg5: memref<1x256xf32, #tpu.memory_space<vmem>>, %arg6: memref<3x256x256xbf16, #tpu.memory_space<vmem>>, %arg7: memref<1x256xf32, #tpu.memory_space<vmem>>, %arg8: memref<8x256xbf16, #tpu.memory_space<vmem>>, %arg9: memref<1x1xf32, #tpu.memory_space<vmem>>, %arg10: memref<1x8x128xf32, #tpu.memory_space<vmem>>, %arg11: memref<160x256xbf16, #tpu.memory_space<vmem>>) attributes {dimension_semantics = [#tpu.dimension_semantics<parallel>], iteration_bounds = array<i64: 1>, scalar_prefetch = 0 : i64, scratch_operands = 1 : i64, tpu.core_type = #tpu.core_type<tc>, window_params = [{transform_indices = @transform_0, window_bounds = array<i64: 1, 128, 256>}, {pipeline_mode = #tpu.pipeline_mode<synchronous>, transform_indices = @transform_1, window_bounds = array<i64: 3, 256, 256>}, {pipeline_mode = #tpu.pipeline_mode<synchronous>, transform_indices = @transform_2, window_bounds = array<i64: 1, 256>}, {pipeline_mode = #tpu.pipeline_mode<synchronous>, transform_indices = @transform_3, window_bounds = array<i64: 3, 256, 256>}, {pipeline_mode = #tpu.pipeline_mode<synchronous>, transform_indices = @transform_4, window_bounds = array<i64: 1, 256>}, {pipeline_mode = #tpu.pipeline_mode<synchronous>, transform_indices = @transform_5, window_bounds = array<i64: 3, 256, 256>}, {pipeline_mode = #tpu.pipeline_mode<synchronous>, transform_indices = @transform_6, window_bounds = array<i64: 1, 256>}, {pipeline_mode = #tpu.pipeline_mode<synchronous>, transform_indices = @transform_7, window_bounds = array<i64: 8, 256>}, {pipeline_mode = #tpu.pipeline_mode<synchronous>, transform_indices = @transform_8, window_bounds = array<i64: 1, 1>}, {transform_indices = @transform_9, window_bounds = array<i64: 1, 8, 128>}]} {
    %cst = arith.constant 0.000000e+00 : bf16
    %0 = vector.broadcast %cst : bf16 to vector<16x256xbf16>
    %c0 = arith.constant 0 : index
    %c0_0 = arith.constant 0 : index
    %1 = vector.load %arg11[%c0, %c0_0] : memref<160x256xbf16, #tpu.memory_space<vmem>>, vector<16x256xbf16>
    tpu.vector_store %arg11[%c0, %c0_0], %0 {strides = array<i32>} : memref<160x256xbf16, #tpu.memory_space<vmem>>, vector<16x256xbf16>,
    %cst_1 = arith.constant 0.000000e+00 : bf16
    %2 = vector.broadcast %cst_1 : bf16 to vector<16x256xbf16>
    %c144 = arith.constant 144 : index
    %c0_2 = arith.constant 0 : index
    %3 = vector.load %arg11[%c144, %c0_2] : memref<160x256xbf16, #tpu.memory_space<vmem>>, vector<16x256xbf16>
    tpu.vector_store %arg11[%c144, %c0_2], %2 {strides = array<i32>} : memref<160x256xbf16, #tpu.memory_space<vmem>>, vector<16x256xbf16>,
    %c0_3 = arith.constant 0 : index
    %c0_4 = arith.constant 0 : index
    %c0_5 = arith.constant 0 : index
    %4 = vector.load %arg1[%c0_3, %c0_4, %c0_5] : memref<1x128x256xbf16, #tpu.memory_space<vmem>>, vector<1x128x256xbf16>
    %5 = vector.shape_cast %4 : vector<1x128x256xbf16> to vector<128x256xbf16>
    %c16 = arith.constant 16 : index
    %c0_6 = arith.constant 0 : index
    %6 = vector.load %arg11[%c16, %c0_6] : memref<160x256xbf16, #tpu.memory_space<vmem>>, vector<128x256xbf16>
    tpu.vector_store %arg11[%c16, %c0_6], %5 {strides = array<i32>} : memref<160x256xbf16, #tpu.memory_space<vmem>>, vector<128x256xbf16>,
    %c1 = arith.constant 1 : index
    %c0_7 = arith.constant 0 : index
    %c0_8 = arith.constant 0 : index
    %7 = vector.load %arg2[%c1, %c0_7, %c0_8] : memref<3x256x256xbf16, #tpu.memory_space<vmem>>, vector<1x256x256xbf16>
    %8 = vector.shape_cast %7 : vector<1x256x256xbf16> to vector<256x256xbf16>
    %cst_9 = arith.constant dense<0.000000e+00> : vector<128x256xf32>
    %9 = tpu.matmul %5, %8, %cst_9 {dimension_numbers = #tpu.dot_dimension_numbers<[1], [0], [0], [1], [0, 0, 1, 1], [], []>} : vector<128x256xbf16>, vector<256x256xbf16>, vector<128x256xf32> -> vector<128x256xf32>
    %c0_10 = arith.constant 0 : index
    %c0_11 = arith.constant 0 : index
    %10 = vector.load %arg11[%c0_10, %c0_11] : memref<160x256xbf16, #tpu.memory_space<vmem>>, vector<128x256xbf16>
    %c0_12 = arith.constant 0 : index
    %c0_13 = arith.constant 0 : index
    %c0_14 = arith.constant 0 : index
    %11 = vector.load %arg2[%c0_12, %c0_13, %c0_14] : memref<3x256x256xbf16, #tpu.memory_space<vmem>>, vector<1x256x256xbf16>
    %12 = vector.shape_cast %11 : vector<1x256x256xbf16> to vector<256x256xbf16>
    %cst_15 = arith.constant dense<0.000000e+00> : vector<128x256xf32>
    %13 = tpu.matmul %10, %12, %cst_15 {dimension_numbers = #tpu.dot_dimension_numbers<[1], [0], [0], [1], [0, 0, 1, 1], [], []>} : vector<128x256xbf16>, vector<256x256xbf16>, vector<128x256xf32> -> vector<128x256xf32>
    %14 = arith.addf %9, %13 : vector<128x256xf32>
    %c32 = arith.constant 32 : index
    %c0_16 = arith.constant 0 : index
    %15 = vector.load %arg11[%c32, %c0_16] : memref<160x256xbf16, #tpu.memory_space<vmem>>, vector<128x256xbf16>
    %c2 = arith.constant 2 : index
    %c0_17 = arith.constant 0 : index
    %c0_18 = arith.constant 0 : index
    %16 = vector.load %arg2[%c2, %c0_17, %c0_18] : memref<3x256x256xbf16, #tpu.memory_space<vmem>>, vector<1x256x256xbf16>
    %17 = vector.shape_cast %16 : vector<1x256x256xbf16> to vector<256x256xbf16>
    %cst_19 = arith.constant dense<0.000000e+00> : vector<128x256xf32>
    %18 = tpu.matmul %15, %17, %cst_19 {dimension_numbers = #tpu.dot_dimension_numbers<[1], [0], [0], [1], [0, 0, 1, 1], [], []>} : vector<128x256xbf16>, vector<256x256xbf16>, vector<128x256xf32> -> vector<128x256xf32>
    %19 = arith.addf %14, %18 : vector<128x256xf32>
    %c0_20 = arith.constant 0 : index
    %c0_21 = arith.constant 0 : index
    %20 = vector.load %arg3[%c0_20, %c0_21] : memref<1x256xf32, #tpu.memory_space<vmem>>, vector<1x256xf32>
    %21 = vector.broadcast %20 : vector<1x256xf32> to vector<128x256xf32>
    %22 = arith.addf %19, %21 : vector<128x256xf32>
    %cst_22 = arith.constant 0.000000e+00 : f32
    %23 = vector.broadcast %cst_22 : f32 to vector<128x256xf32>
    %24 = arith.maximumf %22, %23 : vector<128x256xf32>
    %25 = arith.truncf %24 : vector<128x256xf32> to vector<128x256xbf16>
    %c16_23 = arith.constant 16 : index
    %c0_24 = arith.constant 0 : index
    %26 = vector.load %arg11[%c16_23, %c0_24] : memref<160x256xbf16, #tpu.memory_space<vmem>>, vector<128x256xbf16>
    tpu.vector_store %arg11[%c16_23, %c0_24], %25 {strides = array<i32>} : memref<160x256xbf16, #tpu.memory_space<vmem>>, vector<128x256xbf16>,
    %c1_25 = arith.constant 1 : index
    %c0_26 = arith.constant 0 : index
    %c0_27 = arith.constant 0 : index
    %27 = vector.load %arg4[%c1_25, %c0_26, %c0_27] : memref<3x256x256xbf16, #tpu.memory_space<vmem>>, vector<1x256x256xbf16>
    %28 = vector.shape_cast %27 : vector<1x256x256xbf16> to vector<256x256xbf16>
    %cst_28 = arith.constant dense<0.000000e+00> : vector<128x256xf32>
    %29 = tpu.matmul %25, %28, %cst_28 {dimension_numbers = #tpu.dot_dimension_numbers<[1], [0], [0], [1], [0, 0, 1, 1], [], []>} : vector<128x256xbf16>, vector<256x256xbf16>, vector<128x256xf32> -> vector<128x256xf32>
    %c0_29 = arith.constant 0 : index
    %c0_30 = arith.constant 0 : index
    %30 = vector.load %arg11[%c0_29, %c0_30] : memref<160x256xbf16, #tpu.memory_space<vmem>>, vector<128x256xbf16>
    %c0_31 = arith.constant 0 : index
    %c0_32 = arith.constant 0 : index
    %c0_33 = arith.constant 0 : index
    %31 = vector.load %arg4[%c0_31, %c0_32, %c0_33] : memref<3x256x256xbf16, #tpu.memory_space<vmem>>, vector<1x256x256xbf16>
    %32 = vector.shape_cast %31 : vector<1x256x256xbf16> to vector<256x256xbf16>
    %cst_34 = arith.constant dense<0.000000e+00> : vector<128x256xf32>
    %33 = tpu.matmul %30, %32, %cst_34 {dimension_numbers = #tpu.dot_dimension_numbers<[1], [0], [0], [1], [0, 0, 1, 1], [], []>} : vector<128x256xbf16>, vector<256x256xbf16>, vector<128x256xf32> -> vector<128x256xf32>
    %34 = arith.addf %29, %33 : vector<128x256xf32>
    %c32_35 = arith.constant 32 : index
    %c0_36 = arith.constant 0 : index
    %35 = vector.load %arg11[%c32_35, %c0_36] : memref<160x256xbf16, #tpu.memory_space<vmem>>, vector<128x256xbf16>
    %c2_37 = arith.constant 2 : index
    %c0_38 = arith.constant 0 : index
    %c0_39 = arith.constant 0 : index
    %36 = vector.load %arg4[%c2_37, %c0_38, %c0_39] : memref<3x256x256xbf16, #tpu.memory_space<vmem>>, vector<1x256x256xbf16>
    %37 = vector.shape_cast %36 : vector<1x256x256xbf16> to vector<256x256xbf16>
    %cst_40 = arith.constant dense<0.000000e+00> : vector<128x256xf32>
    %38 = tpu.matmul %35, %37, %cst_40 {dimension_numbers = #tpu.dot_dimension_numbers<[1], [0], [0], [1], [0, 0, 1, 1], [], []>} : vector<128x256xbf16>, vector<256x256xbf16>, vector<128x256xf32> -> vector<128x256xf32>
    %39 = arith.addf %34, %38 : vector<128x256xf32>
    %c0_41 = arith.constant 0 : index
    %c0_42 = arith.constant 0 : index
    %40 = vector.load %arg5[%c0_41, %c0_42] : memref<1x256xf32, #tpu.memory_space<vmem>>, vector<1x256xf32>
    %41 = vector.broadcast %40 : vector<1x256xf32> to vector<128x256xf32>
    %42 = arith.addf %39, %41 : vector<128x256xf32>
    %cst_43 = arith.constant 0.000000e+00 : f32
    %43 = vector.broadcast %cst_43 : f32 to vector<128x256xf32>
    %44 = arith.maximumf %42, %43 : vector<128x256xf32>
    %45 = arith.truncf %44 : vector<128x256xf32> to vector<128x256xbf16>
    %c16_44 = arith.constant 16 : index
    %c0_45 = arith.constant 0 : index
    %46 = vector.load %arg11[%c16_44, %c0_45] : memref<160x256xbf16, #tpu.memory_space<vmem>>, vector<128x256xbf16>
    tpu.vector_store %arg11[%c16_44, %c0_45], %45 {strides = array<i32>} : memref<160x256xbf16, #tpu.memory_space<vmem>>, vector<128x256xbf16>,
    %c1_46 = arith.constant 1 : index
    %c0_47 = arith.constant 0 : index
    %c0_48 = arith.constant 0 : index
    %47 = vector.load %arg6[%c1_46, %c0_47, %c0_48] : memref<3x256x256xbf16, #tpu.memory_space<vmem>>, vector<1x256x256xbf16>
    %48 = vector.shape_cast %47 : vector<1x256x256xbf16> to vector<256x256xbf16>
    %cst_49 = arith.constant dense<0.000000e+00> : vector<128x256xf32>
    %49 = tpu.matmul %45, %48, %cst_49 {dimension_numbers = #tpu.dot_dimension_numbers<[1], [0], [0], [1], [0, 0, 1, 1], [], []>} : vector<128x256xbf16>, vector<256x256xbf16>, vector<128x256xf32> -> vector<128x256xf32>
    %c0_50 = arith.constant 0 : index
    %c0_51 = arith.constant 0 : index
    %50 = vector.load %arg11[%c0_50, %c0_51] : memref<160x256xbf16, #tpu.memory_space<vmem>>, vector<128x256xbf16>
    %c0_52 = arith.constant 0 : index
    %c0_53 = arith.constant 0 : index
    %c0_54 = arith.constant 0 : index
    %51 = vector.load %arg6[%c0_52, %c0_53, %c0_54] : memref<3x256x256xbf16, #tpu.memory_space<vmem>>, vector<1x256x256xbf16>
    %52 = vector.shape_cast %51 : vector<1x256x256xbf16> to vector<256x256xbf16>
    %cst_55 = arith.constant dense<0.000000e+00> : vector<128x256xf32>
    %53 = tpu.matmul %50, %52, %cst_55 {dimension_numbers = #tpu.dot_dimension_numbers<[1], [0], [0], [1], [0, 0, 1, 1], [], []>} : vector<128x256xbf16>, vector<256x256xbf16>, vector<128x256xf32> -> vector<128x256xf32>
    %54 = arith.addf %49, %53 : vector<128x256xf32>
    %c32_56 = arith.constant 32 : index
    %c0_57 = arith.constant 0 : index
    %55 = vector.load %arg11[%c32_56, %c0_57] : memref<160x256xbf16, #tpu.memory_space<vmem>>, vector<128x256xbf16>
    %c2_58 = arith.constant 2 : index
    %c0_59 = arith.constant 0 : index
    %c0_60 = arith.constant 0 : index
    %56 = vector.load %arg6[%c2_58, %c0_59, %c0_60] : memref<3x256x256xbf16, #tpu.memory_space<vmem>>, vector<1x256x256xbf16>
    %57 = vector.shape_cast %56 : vector<1x256x256xbf16> to vector<256x256xbf16>
    %cst_61 = arith.constant dense<0.000000e+00> : vector<128x256xf32>
    %58 = tpu.matmul %55, %57, %cst_61 {dimension_numbers = #tpu.dot_dimension_numbers<[1], [0], [0], [1], [0, 0, 1, 1], [], []>} : vector<128x256xbf16>, vector<256x256xbf16>, vector<128x256xf32> -> vector<128x256xf32>
    %59 = arith.addf %54, %58 : vector<128x256xf32>
    %c0_62 = arith.constant 0 : index
    %c0_63 = arith.constant 0 : index
    %60 = vector.load %arg7[%c0_62, %c0_63] : memref<1x256xf32, #tpu.memory_space<vmem>>, vector<1x256xf32>
    %61 = vector.broadcast %60 : vector<1x256xf32> to vector<128x256xf32>
    %62 = arith.addf %59, %61 : vector<128x256xf32>
    %cst_64 = arith.constant 0.000000e+00 : f32
    %63 = vector.broadcast %cst_64 : f32 to vector<128x256xf32>
    %64 = arith.maximumf %62, %63 : vector<128x256xf32>
    %65 = arith.truncf %64 : vector<128x256xf32> to vector<128x256xbf16>
    %c0_65 = arith.constant 0 : index
    %c0_66 = arith.constant 0 : index
    %66 = vector.load %arg8[%c0_65, %c0_66] : memref<8x256xbf16, #tpu.memory_space<vmem>>, vector<8x256xbf16>
    %cst_67 = arith.constant dense<0.000000e+00> : vector<8x128xf32>
    %67 = tpu.matmul %66, %65, %cst_67 {dimension_numbers = #tpu.dot_dimension_numbers<[1], [1], [0], [0], [0, 0, 1, 0], [], []>} : vector<8x256xbf16>, vector<128x256xbf16>, vector<8x128xf32> -> vector<8x128xf32>
    %c0_68 = arith.constant 0 : index
    %c0_69 = arith.constant 0 : index
    %68 = vector.load %arg9[%c0_68, %c0_69] : memref<1x1xf32, #tpu.memory_space<vmem>>, vector<1x1xf32>
    %69 = vector.broadcast %68 : vector<1x1xf32> to vector<8x128xf32>
    %70 = arith.addf %67, %69 : vector<8x128xf32>
    %c0_70 = arith.constant 0 : index
    %c0_71 = arith.constant 0 : index
    %c0_72 = arith.constant 0 : index
    %71 = vector.load %arg10[%c0_70, %c0_71, %c0_72] : memref<1x8x128xf32, #tpu.memory_space<vmem>>, vector<1x8x128xf32>
    %72 = vector.shape_cast %71 : vector<1x8x128xf32> to vector<8x128xf32>
    %73 = vector.shape_cast %70 : vector<8x128xf32> to vector<1x8x128xf32>
    tpu.vector_store %arg10[%c0_70, %c0_71, %c0_72], %73 {strides = array<i32>} : memref<1x8x128xf32, #tpu.memory_space<vmem>>, vector<1x8x128xf32>,
    return
  }
  func.func @transform_0(%arg0: i32) -> (i32, i32, i32) {
    %c0_i32 = arith.constant 0 : i32
    %c0_i32_0 = arith.constant 0 : i32
    %c0_i32_1 = arith.constant 0 : i32
    return %arg0, %c0_i32, %c0_i32_0 : i32, i32, i32
  }
  func.func @transform_1(%arg0: i32) -> (i32, i32, i32) {
    %c0_i32 = arith.constant 0 : i32
    %c0_i32_0 = arith.constant 0 : i32
    %c0_i32_1 = arith.constant 0 : i32
    %c0_i32_2 = arith.constant 0 : i32
    return %c0_i32, %c0_i32_0, %c0_i32_1 : i32, i32, i32
  }
  func.func @transform_2(%arg0: i32) -> (i32, i32) {
    %c0_i32 = arith.constant 0 : i32
    %c0_i32_0 = arith.constant 0 : i32
    %c0_i32_1 = arith.constant 0 : i32
    return %c0_i32, %c0_i32_0 : i32, i32
  }
  func.func @transform_3(%arg0: i32) -> (i32, i32, i32) {
    %c0_i32 = arith.constant 0 : i32
    %c0_i32_0 = arith.constant 0 : i32
    %c0_i32_1 = arith.constant 0 : i32
    %c0_i32_2 = arith.constant 0 : i32
    return %c0_i32, %c0_i32_0, %c0_i32_1 : i32, i32, i32
  }
  func.func @transform_4(%arg0: i32) -> (i32, i32) {
    %c0_i32 = arith.constant 0 : i32
    %c0_i32_0 = arith.constant 0 : i32
    %c0_i32_1 = arith.constant 0 : i32
    return %c0_i32, %c0_i32_0 : i32, i32
  }
  func.func @transform_5(%arg0: i32) -> (i32, i32, i32) {
    %c0_i32 = arith.constant 0 : i32
    %c0_i32_0 = arith.constant 0 : i32
    %c0_i32_1 = arith.constant 0 : i32
    %c0_i32_2 = arith.constant 0 : i32
    return %c0_i32, %c0_i32_0, %c0_i32_1 : i32, i32, i32
  }
  func.func @transform_6(%arg0: i32) -> (i32, i32) {
    %c0_i32 = arith.constant 0 : i32
    %c0_i32_0 = arith.constant 0 : i32
    %c0_i32_1 = arith.constant 0 : i32
    return %c0_i32, %c0_i32_0 : i32, i32
  }
  func.func @transform_7(%arg0: i32) -> (i32, i32) {
    %c0_i32 = arith.constant 0 : i32
    %c0_i32_0 = arith.constant 0 : i32
    %c0_i32_1 = arith.constant 0 : i32
    return %c0_i32, %c0_i32_0 : i32, i32
  }
  func.func @transform_8(%arg0: i32) -> (i32, i32) {
    %c0_i32 = arith.constant 0 : i32
    %c0_i32_0 = arith.constant 0 : i32
    %c0_i32_1 = arith.constant 0 : i32
    return %c0_i32, %c0_i32_0 : i32, i32
  }
  func.func @transform_9(%arg0: i32) -> (i32, i32, i32) {
    %c0_i32 = arith.constant 0 : i32
    %c0_i32_0 = arith.constant 0 : i32
    %c0_i32_1 = arith.constant 0 : i32
    return %arg0, %c0_i32, %c0_i32_0 : i32, i32, i32
  }
}

</mosaic_0001>

<bundles_post_ra>
// kernel: tpu_custom_call.1
= control target key start
LH: loop header
LB: loop body
LE: loop exit
PB: predicated region body
PF: predicated region fallthrough
CT: control target
= control target key end

     0   :  { %s6086_s0 = inlined_call_operand.hbm [shape: bf16[1,128,256], index: 0, kind: input, shape index: {}]   ;;  %s6087_s1 = inlined_call_operand.hbm [shape: bf16[3,256,256], index: 1, kind: input, shape index: {}]   ;;  %s6088_s2 = inlined_call_operand.vmem [shape: f32[1,256], index: 2, kind: input, shape index: {}]   ;;  %s6089_s3 = inlined_call_operand.hbm [shape: bf16[3,256,256], index: 3, kind: input, shape index: {}]   ;;  %s6090_s4 = inlined_call_operand.vmem [shape: f32[1,256], index: 4, kind: input, shape index: {}]   ;;  %s6091_s5 = inlined_call_operand.hbm [shape: bf16[3,256,256], index: 5, kind: input, shape index: {}]   ;;  %s6092_s6 = inlined_call_operand.vmem [shape: f32[1,256], index: 6, kind: input, shape index: {}]   ;;  %s6093_s7 = inlined_call_operand.vmem [shape: bf16[8,256], index: 7, kind: input, shape index: {}]   ;;  %s6094_s8 = inlined_call_operand.<no memory space> [shape: f32[1,1], index: 8, kind: input, shape index: {}]   ;;  %s6095_s9 = inlined_call_operand.hbm [shape: f32[1,8,128], index: 9, kind: output, shape index: {}]  }
   0x1   :  { %v14_v0 = vstv %s6094_s8 }
   0x2   :  { %15 = vst [vmem:[#allocation3] sm:$0x1] %v14_v0 }
   0x3   :  { %16 = vsyncpa [#allocation5], 0 }
   0x4   :  { %17 = vsyncpa [#allocation8], 0 }
   0x5   :  { %18 = vsyncpa [#allocation11], 0 }
   0x6   :  { %19 = vsyncpa [#allocation6], 0  ;;  %s5248_s11 = smov [#allocation7]   ;;  %s5249_s13 = smov [#allocation4]  }
   0x7   :  { %s37_s12 = sshll.u32 %s5248_s11, 4  ;;  %s25_s14 = sshll.u32 %s5249_s13, 4  ;;  %s38_s12 = int_to_ptr.vmem [resolvable:$true] %s37_s12  ;;  %s26_s14 = int_to_ptr.vmem [resolvable:$true] %s25_s14 }
   0x8   :  { %s5148_s15 = scalar_lea.vmem %s38_s12, 12288  ;;  %p5153_p1 = scmp.lt.s32.totalorder %s38_s12, %s38_s12 }
   0x9   :  { %p5149_p0 = scmp.ne.s32.totalorder %s38_s12, %s5148_s15  ;;  %p5154_p2 = scmp.lt.s32.totalorder %s5148_s15, %s5148_s15 }
   0xb   :  { %p5155_p3 = por %p5154_p2, %p5153_p1 }
   0xd   :  { %p5156_p4 = pnand %p5155_p3, %p5149_p0 }
   0xf   :  { %5159 = shalt.err (!%p5156_p4)
}
  0x10   :  { %s5250_s16 = smov 128   ;;  %s5251_s8 = smov 8  }
  0x11   :  { %43 = dma.hbm_to_vmem [thread:$0]  %s6087_s1, 12288, %s38_s12, [#allocation8], %s5250_s16, %s5250_s16, %s5251_s8  }
  0x12   :  { %s5168_s19 = scalar_lea.vmem %s26_s14, 2048  ;;  %p5173_p6 = scmp.lt.s32.totalorder %s26_s14, %s26_s14 }
  0x13   :  { %p5169_p5 = scmp.ne.s32.totalorder %s26_s14, %s5168_s19  ;;  %p5174_p7 = scmp.lt.s32.totalorder %s5168_s19, %s5168_s19 }
  0x15   :  { %p5175_p8 = por %p5174_p7, %p5173_p6 }
  0x17   :  { %p5176_p9 = pnand %p5175_p8, %p5169_p5 }
  0x19   :  { %5179 = shalt.err (!%p5176_p9)
}
  0x1a   :  { %31 = dma.hbm_to_vmem [thread:$0]  %s6086_s0, 2048, %s26_s14, [#allocation5], %s5250_s16, %s5250_s16, %s5251_s8  }
  0x1b   :  { %s5252_s22 = smov [#allocation9]   ;;  %s5253_s24 = smov [#allocation10]  }
  0x1c   :  { %s51_s23 = sshll.u32 %s5252_s22, 4  ;;  %s65_s25 = sshll.u32 %s5253_s24, 4  ;;  %s52_s23 = int_to_ptr.vmem [resolvable:$true] %s51_s23  ;;  %s66_s25 = int_to_ptr.vmem [resolvable:$true] %s65_s25 }
  0x1d   :  { %s5188_s1 = scalar_lea.vmem %s52_s23, 12288  ;;  %p5193_p11 = scmp.lt.s32.totalorder %s52_s23, %s52_s23 }
  0x1e   :  { %p5189_p10 = scmp.ne.s32.totalorder %s52_s23, %s5188_s1  ;;  %p5194_p12 = scmp.lt.s32.totalorder %s5188_s1, %s5188_s1 }
  0x20   :  { %p5195_p13 = por %p5194_p12, %p5193_p11 }
  0x22   :  { %p5196_p0 = pnand %p5195_p13, %p5189_p10 }
  0x24   :  { %5199 = shalt.err (!%p5196_p0)
}
  0x25   :  { %57 = dma.hbm_to_vmem [thread:$0]  %s6089_s3, 12288, %s52_s23, [#allocation8], %s5250_s16, %s5250_s16, %s5251_s8  }
  0x26   :  { %s5208_s0 = scalar_lea.vmem %s66_s25, 12288  ;;  %p5213_p2 = scmp.lt.s32.totalorder %s66_s25, %s66_s25 }
  0x27   :  { %p5209_p1 = scmp.ne.s32.totalorder %s66_s25, %s5208_s0  ;;  %p5214_p3 = scmp.lt.s32.totalorder %s5208_s0, %s5208_s0 }
  0x29   :  { %p5215_p4 = por %p5214_p3, %p5213_p2 }
  0x2b   :  { %p5216_p5 = pnand %p5215_p4, %p5209_p1 }
  0x2d   :  { %5219 = shalt.err (!%p5216_p5)
}
  0x2e   :  { %71 = dma.hbm_to_vmem [thread:$0]  %s6091_s5, 12288, %s66_s25, [#allocation11], %s5250_s16, %s5250_s16, %s5251_s8  }
  0x2f   :  { %5240 = dma.done.wait [#allocation5], 2048  }
  0x30   :  { %5241 = vsyncadd [#allocation5], 4294965248 }
  0x31   :  { %5242 = dma.done.wait [#allocation8], 24576  }
  0x32   :  { %5243 = vsyncadd [#allocation8], 4294942720 }
  0x33   :  { %5244 = dma.done.wait [#allocation11], 12288  }
  0x34   :  { %5245 = vsyncadd [#allocation11], 4294955008  ;;  %v5254_v1 = vmov 0   ;;  %v4682_v3 = vld [vmem:[#allocation7 + $0x74] ss:$8 sps:$4 sm:$0xff]  }
  0x35   :  { %v5335_v2 = vcombine.high %v5254_v1, %v5254_v1  ;;  %4681 = vset.pattern.permute.xlu0 %v5254_v1  ;;  %v4684_v4 = vld [vmem:[#allocation7 + $0x174] ss:$8 sps:$4 sm:$0xff]   ;;  %448 = vmatprep.subr.bf16.mxu0 %v4682_v3  ;;  %v4686_v5 = vld [vmem:[#allocation7 + $0x70] ss:$8 sps:$4 sm:$0xff]   ;;  %v4688_v7 = vld [vmem:[#allocation7 + $0x64] ss:$8 sps:$4 sm:$0xff]  }
  0x36   :  { %v4687_v6 = vld [vmem:[#allocation7 + $0x170] ss:$8 sps:$4 sm:$0xff]   ;;  %801 = vmatprep.subr.bf16.mxu1 %v4684_v4  ;;  %449 = vmatpush1.bf16.msra.mxu0 %v4686_v5  ;;  %v4690_v8 = vld [vmem:[#allocation7 + $0x164] ss:$8 sps:$4 sm:$0xff]   ;;  %v4692_v9 = vld [vmem:[#allocation7 + $0x60] ss:$8 sps:$4 sm:$0xff]  }
  0x37   :  { %6102 = vst [vmem:[#allocation17_spill] sm:$0xff] %v5335_v2  ;;  %480 = vmatprep.mubr.bf16.mxu0 %v5335_v2  ;;  %802 = vmatpush1.bf16.msra.mxu1 %v4687_v6  ;;  %v4693_v10 = vld [vmem:[#allocation7 + $0x160] ss:$8 sps:$4 sm:$0xff]   ;;  %v4694_v11 = vld [vmem:[#allocation7 + $0x54] ss:$8 sps:$4 sm:$0xff]  }
  0x38   :  { %450 = vmatprep.subr.bf16.mxu0 %v4688_v7  ;;  %803 = vmatprep.subr.bf16.mxu1 %v4690_v8  ;;  %v4696_v12 = vld [vmem:[#allocation7 + $0x154] ss:$8 sps:$4 sm:$0xff]   ;;  %v4698_v13 = vld [vmem:[#allocation7 + $0x50] ss:$8 sps:$4 sm:$0xff]   ;;  %v4700_v15 = vld [vmem:[#allocation7 + $0x44] ss:$8 sps:$4 sm:$0xff]   ;;  %v5341_v8 = vcombine.low %v5254_v1, %v5254_v1 }
  0x39   :  { %v4699_v14 = vld [vmem:[#allocation7 + $0x150] ss:$8 sps:$4 sm:$0xff]   ;;  %v4702_v16 = vld [vmem:[#allocation7 + $0x144] ss:$8 sps:$4 sm:$0xff]   ;;  %v4704_v17 = vld [vmem:[#allocation7 + $0x40] ss:$8 sps:$4 sm:$0xff]  }
  0x3a   :  { %451 = vmatpush1.bf16.msra.mxu0 %v4692_v9  ;;  %v4705_v18 = vld [vmem:[#allocation7 + $0x140] ss:$8 sps:$4 sm:$0xff]   ;;  %v4706_v19 = vld [vmem:[#allocation7 + $0x34] ss:$8 sps:$4 sm:$0xff]   ;;  %v4710_v21 = vld [vmem:[#allocation7 + $0x30] ss:$8 sps:$4 sm:$0xff]  }
  0x3b   :  { %804 = vmatpush1.bf16.msra.mxu1 %v4693_v10  ;;  %452 = vmatprep.subr.bf16.mxu0 %v4694_v11  ;;  %v4708_v20 = vld [vmem:[#allocation7 + $0x134] ss:$8 sps:$4 sm:$0xff]   ;;  %v4711_v22 = vld [vmem:[#allocation7 + $0x130] ss:$8 sps:$4 sm:$0xff]   ;;  %v4712_v23 = vld [vmem:[#allocation7 + $0x24] ss:$8 sps:$4 sm:$0xff]  }
  0x3c   :  { %805 = vmatprep.subr.bf16.mxu1 %v4696_v12  ;;  %v4714_v24 = vld [vmem:[#allocation7 + $0x124] ss:$8 sps:$4 sm:$0xff]   ;;  %v4716_v25 = vld [vmem:[#allocation7 + $0x20] ss:$8 sps:$4 sm:$0xff]   ;;  %v4718_v27 = vld [vmem:[#allocation7 + $0x14] ss:$8 sps:$4 sm:$0xff]  }
  0x3d   :  { %v4717_v26 = vld [vmem:[#allocation7 + $0x120] ss:$8 sps:$4 sm:$0xff]   ;;  %v4720_v28 = vld [vmem:[#allocation7 + $0x114] ss:$8 sps:$4 sm:$0xff]   ;;  %v4722_v29 = vld [vmem:[#allocation7 + $0x10] ss:$8 sps:$4 sm:$0xff]  }
  0x3e   :  { %453 = vmatpush1.bf16.msra.mxu0 %v4698_v13  ;;  %v4723_v30 = vld [vmem:[#allocation7 + $0x110] ss:$8 sps:$4 sm:$0xff]   ;;  %v4724_v31 = vld [vmem:[#allocation7 + $0x4] ss:$8 sps:$4 sm:$0xff]   ;;  %v4728_v33 = vld [vmem:[#allocation7] ss:$8 sps:$4 sm:$0xff]  }
  0x3f   :  { %806 = vmatpush1.bf16.msra.mxu1 %v4699_v14  ;;  %454 = vmatprep.subr.bf16.mxu0 %v4700_v15  ;;  %v4726_v32 = vld [vmem:[#allocation7 + $0x104] ss:$8 sps:$4 sm:$0xff]   ;;  %v4729_v34 = vld [vmem:[#allocation7 + $0x100] ss:$8 sps:$4 sm:$0xff]   ;;  %v4730_v35 = vld [vmem:[#allocation7 + $0xf4] ss:$8 sps:$4 sm:$0xff]  }
  0x40   :  { %807 = vmatprep.subr.bf16.mxu1 %v4702_v16  ;;  %v4732_v36 = vld [vmem:[#allocation7 + $0x1f4] ss:$8 sps:$4 sm:$0xff]   ;;  %v4734_v37 = vld [vmem:[#allocation7 + $0xf0] ss:$8 sps:$4 sm:$0xff]   ;;  %v4736_v39 = vld [vmem:[#allocation7 + $0xe4] ss:$8 sps:$4 sm:$0xff]  }
  0x41   :  { %v4735_v38 = vld [vmem:[#allocation7 + $0x1f0] ss:$8 sps:$4 sm:$0xff]   ;;  %v4738_v40 = vld [vmem:[#allocation7 + $0x1e4] ss:$8 sps:$4 sm:$0xff]   ;;  %v4740_v41 = vld [vmem:[#allocation7 + $0xe0] ss:$8 sps:$4 sm:$0xff]  }
  0x42   :  { %455 = vmatpush1.bf16.msra.mxu0 %v4704_v17  ;;  %v4741_v42 = vld [vmem:[#allocation7 + $0x1e0] ss:$8 sps:$4 sm:$0xff]   ;;  %v4742_v43 = vld [vmem:[#allocation7 + $0xd4] ss:$8 sps:$4 sm:$0xff]   ;;  %v4746_v45 = vld [vmem:[#allocation7 + $0xd0] ss:$8 sps:$4 sm:$0xff]  }
  0x43   :  { %808 = vmatpush1.bf16.msra.mxu1 %v4705_v18  ;;  %456 = vmatprep.subr.bf16.mxu0 %v4706_v19  ;;  %v4744_v44 = vld [vmem:[#allocation7 + $0x1d4] ss:$8 sps:$4 sm:$0xff]   ;;  %v4747_v46 = vld [vmem:[#allocation7 + $0x1d0] ss:$8 sps:$4 sm:$0xff]   ;;  %v4748_v47 = vld [vmem:[#allocation7 + $0xc4] ss:$8 sps:$4 sm:$0xff]  }
  0x44   :  { %809 = vmatprep.subr.bf16.mxu1 %v4708_v20  ;;  %v4750_v48 = vld [vmem:[#allocation7 + $0x1c4] ss:$8 sps:$4 sm:$0xff]   ;;  %v4752_v49 = vld [vmem:[#allocation7 + $0xc0] ss:$8 sps:$4 sm:$0xff]   ;;  %v4754_v52 = vld [vmem:[#allocation7 + $0xb4] ss:$8 sps:$4 sm:$0xff]  }
  0x45   :  { %v4753_v50 = vld [vmem:[#allocation7 + $0x1c0] ss:$8 sps:$4 sm:$0xff]   ;;  %v4780_v51 = vld [vmem:[#allocation4 + $0x4] ss:$8 sps:$4 sm:$0xff]   ;;  %v4756_v53 = vld [vmem:[#allocation7 + $0x1b4] ss:$8 sps:$4 sm:$0xff]  }
  0x46   :  { %457 = vmatpush1.bf16.msra.mxu0 %v4710_v21  ;;  %833 = vmatprep.mubr.bf16.mxu1 %v4780_v51  ;;  %v4758_v54 = vld [vmem:[#allocation7 + $0xb0] ss:$8 sps:$4 sm:$0xff]   ;;  %v4760_v56 = vld [vmem:[#allocation7 + $0xa4] ss:$8 sps:$4 sm:$0xff]   ;;  %v4764_v58 = vld [vmem:[#allocation7 + $0xa0] ss:$8 sps:$4 sm:$0xff]  }
  0x47   :  { %810 = vmatpush1.bf16.msra.mxu1 %v4711_v22  ;;  %458 = vmatprep.subr.bf16.mxu0 %v4712_v23  ;;  %v4759_v55 = vld [vmem:[#allocation7 + $0x1b0] ss:$8 sps:$4 sm:$0xff]   ;;  %v4762_v57 = vld [vmem:[#allocation7 + $0x1a4] ss:$8 sps:$4 sm:$0xff]   ;;  %v4765_v59 = vld [vmem:[#allocation7 + $0x1a0] ss:$8 sps:$4 sm:$0xff]  }
  0x48   :  { %811 = vmatprep.subr.bf16.mxu1 %v4714_v24  ;;  %v4766_v60 = vld [vmem:[#allocation7 + $0x94] ss:$8 sps:$4 sm:$0xff]   ;;  %v4770_v62 = vld [vmem:[#allocation7 + $0x90] ss:$8 sps:$4 sm:$0xff]   ;;  %v4772_v0 = vld [vmem:[#allocation7 + $0x84] ss:$8 sps:$4 sm:$0xff]  }
  0x49   :  { %v4768_v61 = vld [vmem:[#allocation7 + $0x194] ss:$8 sps:$4 sm:$0xff]   ;;  %v4771_v63 = vld [vmem:[#allocation7 + $0x190] ss:$8 sps:$4 sm:$0xff]   ;;  %v4774_v3 = vld [vmem:[#allocation7 + $0x184] ss:$8 sps:$4 sm:$0xff]  }
  0x4a   :  { %459 = vmatpush1.bf16.msra.mxu0 %v4716_v25  ;;  %v4776_v4 = vld [vmem:[#allocation7 + $0x80] ss:$8 sps:$4 sm:$0xff]   ;;  %v4783_v6 = vld [vmem:[#allocation7 + $0x274] ss:$8 sps:$4 sm:$0xff]   ;;  %6103 = vst [vmem:[#allocation18_spill] sm:$0xff] %v5341_v8 }
  0x4b   :  { %812 = vmatpush1.bf16.msra.mxu1 %v4717_v26  ;;  %460 = vmatprep.subr.bf16.mxu0 %v4718_v27  ;;  %v4777_v5 = vld [vmem:[#allocation7 + $0x180] ss:$8 sps:$4 sm:$0xff]   ;;  %v4781_v9 = vld [vmem:[#allocation7 + $0x270] ss:$8 sps:$4 sm:$0xff]   ;;  %v4786_v10 = vld [vmem:[#allocation7 + $0x264] ss:$8 sps:$4 sm:$0xff]  }
  0x4c   :  { %813 = vmatprep.subr.bf16.mxu1 %v4720_v28  ;;  %v4778_v7 = vld [vmem:[#allocation4] ss:$8 sps:$4 sm:$0xff]   ;;  %v5343_v11 = vld [vmem:[#allocation4 + $0x14] ss:$8 sps:$4 sm:$0xff]   ;;  %v5347_v14 = vld [vmem:[#allocation4 + $0x10] ss:$8 sps:$4 sm:$0xff]  }
  0x4d   :  { %v4784_v12 = vld [vmem:[#allocation7 + $0x260] ss:$8 sps:$4 sm:$0xff]   ;;  %v4792_v13 = vld [vmem:[#allocation7 + $0x254] ss:$8 sps:$4 sm:$0xff]   ;;  %v4790_v1 = vld [vmem:[#allocation7 + $0x250] ss:$8 sps:$4 sm:$0xff]  }
  0x4e   :  { %461 = vmatpush1.bf16.msra.mxu0 %v4722_v29  ;;  %v4795_v15 = vld [vmem:[#allocation7 + $0x244] ss:$8 sps:$4 sm:$0xff]   ;;  %v4793_v17 = vld [vmem:[#allocation7 + $0x240] ss:$8 sps:$4 sm:$0xff]   ;;  %v4801_v18 = vld [vmem:[#allocation7 + $0x234] ss:$8 sps:$4 sm:$0xff]  }
  0x4f   :  { %814 = vmatpush1.bf16.msra.mxu1 %v4723_v30  ;;  %462 = vmatprep.subr.bf16.mxu0 %v4724_v31  ;;  %v5349_v16 = vld [vmem:[#allocation4 + $0x24] ss:$8 sps:$4 sm:$0xff]   ;;  %v5354_v19 = vld [vmem:[#allocation4 + $0x20] ss:$8 sps:$4 sm:$0xff]   ;;  %v4799_v20 = vld [vmem:[#allocation7 + $0x230] ss:$8 sps:$4 sm:$0xff]  }
  0x50   :  { %815 = vmatprep.subr.bf16.mxu1 %v4726_v32  ;;  %v4804_v21 = vld [vmem:[#allocation7 + $0x224] ss:$8 sps:$4 sm:$0xff]   ;;  %v5356_v22 = vld [vmem:[#allocation4 + $0x34] ss:$8 sps:$4 sm:$0xff]   ;;  %v4802_v23 = vld [vmem:[#allocation7 + $0x220] ss:$8 sps:$4 sm:$0xff]  }
  0x51   :  { %v4810_v24 = vld [vmem:[#allocation7 + $0x214] ss:$8 sps:$4 sm:$0xff]   ;;  %v5362_v25 = vld [vmem:[#allocation4 + $0x30] ss:$8 sps:$4 sm:$0xff]   ;;  %v4813_v27 = vld [vmem:[#allocation7 + $0x204] ss:$8 sps:$4 sm:$0xff]  }
  0x52   :  { %463 = vmatpush1.bf16.msra.mxu0 %v4728_v33  ;;  %v4808_v26 = vld [vmem:[#allocation7 + $0x210] ss:$8 sps:$4 sm:$0xff]   ;;  %v5364_v28 = vld [vmem:[#allocation4 + $0x44] ss:$8 sps:$4 sm:$0xff]   ;;  %v4811_v29 = vld [vmem:[#allocation7 + $0x200] ss:$8 sps:$4 sm:$0xff]  }
  0x53   :  { %816 = vmatpush1.bf16.msra.mxu1 %v4729_v34  ;;  %464 = vmatprep.subr.bf16.mxu0 %v4730_v35  ;;  %v4819_v30 = vld [vmem:[#allocation7 + $0x2f4] ss:$8 sps:$4 sm:$0xff]   ;;  %v5370_v31 = vld [vmem:[#allocation4 + $0x40] ss:$8 sps:$4 sm:$0xff]   ;;  %v4817_v32 = vld [vmem:[#allocation7 + $0x2f0] ss:$8 sps:$4 sm:$0xff]  }
  0x54   :  { %817 = vmatprep.subr.bf16.mxu1 %v4732_v36  ;;  %v4822_v33 = vld [vmem:[#allocation7 + $0x2e4] ss:$8 sps:$4 sm:$0xff]   ;;  %v5372_v34 = vld [vmem:[#allocation4 + $0x54] ss:$8 sps:$4 sm:$0xff]   ;;  %v4820_v35 = vld [vmem:[#allocation7 + $0x2e0] ss:$8 sps:$4 sm:$0xff]  }
  0x55   :  { %v4828_v36 = vld [vmem:[#allocation7 + $0x2d4] ss:$8 sps:$4 sm:$0xff]  }
  0x56   :  { %465 = vmatpush2.bf16.msra.mxu0 %v4734_v37  ;;  %v5378_v37 = vld [vmem:[#allocation4 + $0x50] ss:$8 sps:$4 sm:$0xff]  }
  0x57   :  { %818 = vmatpush2.bf16.msra.mxu1 %v4735_v38  ;;  %466 = vmatprep.subr.bf16.mxu0 %v4736_v39  ;;  %v4826_v38 = vld [vmem:[#allocation7 + $0x2d0] ss:$8 sps:$4 sm:$0xff]   ;;  %v4831_v39 = vld [vmem:[#allocation7 + $0x2c4] ss:$8 sps:$4 sm:$0xff]  }
  0x58   :  { %819 = vmatprep.subr.bf16.mxu1 %v4738_v40  ;;  %v5380_v40 = vld [vmem:[#allocation4 + $0x64] ss:$8 sps:$4 sm:$0xff]  }
  0x5a   :  { %467 = vmatpush2.bf16.msra.mxu0 %v4740_v41  ;;  %v4829_v41 = vld [vmem:[#allocation7 + $0x2c0] ss:$8 sps:$4 sm:$0xff]  }
  0x5b   :  { %820 = vmatpush2.bf16.msra.mxu1 %v4741_v42  ;;  %468 = vmatprep.subr.bf16.mxu0 %v4742_v43  ;;  %v4837_v42 = vld [vmem:[#allocation7 + $0x2b4] ss:$8 sps:$4 sm:$0xff]   ;;  %v5386_v43 = vld [vmem:[#allocation4 + $0x60] ss:$8 sps:$4 sm:$0xff]  }
  0x5c   :  { %821 = vmatprep.subr.bf16.mxu1 %v4744_v44  ;;  %v4835_v44 = vld [vmem:[#allocation7 + $0x2b0] ss:$8 sps:$4 sm:$0xff]  }
  0x5e   :  { %469 = vmatpush2.bf16.msra.mxu0 %v4746_v45  ;;  %v4840_v45 = vld [vmem:[#allocation7 + $0x2a4] ss:$8 sps:$4 sm:$0xff]  }
  0x5f   :  { %822 = vmatpush2.bf16.msra.mxu1 %v4747_v46  ;;  %470 = vmatprep.subr.bf16.mxu0 %v4748_v47  ;;  %v5388_v46 = vld [vmem:[#allocation4 + $0x74] ss:$8 sps:$4 sm:$0xff]   ;;  %v4838_v47 = vld [vmem:[#allocation7 + $0x2a0] ss:$8 sps:$4 sm:$0xff]  }
  0x60   :  { %823 = vmatprep.subr.bf16.mxu1 %v4750_v48  ;;  %v4846_v48 = vld [vmem:[#allocation7 + $0x294] ss:$8 sps:$4 sm:$0xff]  }
  0x62   :  { %471 = vmatpush2.bf16.msra.mxu0 %v4752_v49  ;;  %v5394_v49 = vld [vmem:[#allocation4 + $0x70] ss:$8 sps:$4 sm:$0xff]  }
  0x63   :  { %824 = vmatpush2.bf16.msra.mxu1 %v4753_v50  ;;  %472 = vmatprep.subr.bf16.mxu0 %v4754_v52  ;;  %v4844_v50 = vld [vmem:[#allocation7 + $0x290] ss:$8 sps:$4 sm:$0xff]   ;;  %v4847_v52 = vld [vmem:[#allocation7 + $0x280] ss:$8 sps:$4 sm:$0xff]  }
  0x64   :  { %825 = vmatprep.subr.bf16.mxu1 %v4756_v53  ;;  %v4852_v53 = vld [vmem:[#allocation9 + $0x74] ss:$8 sps:$4 sm:$0xff]  }
  0x66   :  { %473 = vmatpush2.bf16.msra.mxu0 %v4758_v54  ;;  %v4850_v54 = vld [vmem:[#allocation9 + $0x70] ss:$8 sps:$4 sm:$0xff]  }
  0x67   :  { %826 = vmatpush2.bf16.msra.mxu1 %v4759_v55  ;;  %474 = vmatprep.subr.bf16.mxu0 %v4760_v56  ;;  %v4855_v55 = vld [vmem:[#allocation9 + $0x64] ss:$8 sps:$4 sm:$0xff]   ;;  %v4853_v56 = vld [vmem:[#allocation9 + $0x60] ss:$8 sps:$4 sm:$0xff]  }
  0x68   :  { %827 = vmatprep.subr.bf16.mxu1 %v4762_v57  ;;  %v4858_v57 = vld [vmem:[#allocation9 + $0x54] ss:$8 sps:$4 sm:$0xff]  }
  0x6a   :  { %475 = vmatpush2.bf16.msra.mxu0 %v4764_v58  ;;  %v4856_v58 = vld [vmem:[#allocation9 + $0x50] ss:$8 sps:$4 sm:$0xff]  }
  0x6b   :  { %828 = vmatpush2.bf16.msra.mxu1 %v4765_v59  ;;  %476 = vmatprep.subr.bf16.mxu0 %v4766_v60  ;;  %v4861_v59 = vld [vmem:[#allocation9 + $0x44] ss:$8 sps:$4 sm:$0xff]   ;;  %v4859_v60 = vld [vmem:[#allocation9 + $0x40] ss:$8 sps:$4 sm:$0xff]  }
  0x6c   :  { %829 = vmatprep.subr.bf16.mxu1 %v4768_v61  ;;  %v4864_v61 = vld [vmem:[#allocation9 + $0x174] ss:$8 sps:$4 sm:$0xff]  }
  0x6e   :  { %477 = vmatpush2.bf16.msra.mxu0 %v4770_v62  ;;  %v4862_v62 = vld [vmem:[#allocation9 + $0x170] ss:$8 sps:$4 sm:$0xff]  }
  0x6f   :  { %830 = vmatpush2.bf16.msra.mxu1 %v4771_v63  ;;  %478 = vmatprep.subr.bf16.mxu0 %v4772_v0  ;;  %v4867_v63 = vld [vmem:[#allocation9 + $0x34] ss:$8 sps:$4 sm:$0xff]   ;;  %v4865_v0 = vld [vmem:[#allocation9 + $0x30] ss:$8 sps:$4 sm:$0xff]  }
  0x70   :  { %831 = vmatprep.subr.bf16.mxu1 %v4774_v3  ;;  %v4870_v3 = vld [vmem:[#allocation9 + $0x164] ss:$8 sps:$4 sm:$0xff]  }
  0x72   :  { %479 = vmatpush2.bf16.msra.mxu0 %v4776_v4  ;;  %v4868_v4 = vld [vmem:[#allocation9 + $0x160] ss:$8 sps:$4 sm:$0xff]  }
  0x73   :  { %832 = vmatpush2.bf16.msra.mxu1 %v4777_v5  ;;  %1203 = vmatprep.subr.bf16.mxu0 %v4783_v6  ;;  %v4873_v5 = vld [vmem:[#allocation9 + $0x24] ss:$8 sps:$4 sm:$0xff]   ;;  %v4871_v6 = vld [vmem:[#allocation9 + $0x20] ss:$8 sps:$4 sm:$0xff]  }
  0x74   :  { %1857 = vmatprep.subr.bf16.mxu1 %v4852_v53  ;;  %v4940_v53 = vld [vmem:[#allocation9 + $0x190] ss:$8 sps:$4 sm:$0xff]  }
  0x75   :  { %481 = vmatmul.mubr.bf16.vlgmr.msra.gmra.mxu0 %v5341_v8 }
  0x76   :  { %834 = vmatmul.mubr.bf16.vlgmr.msra.gmra.mxu1 %v4778_v7  ;;  %1204 = vmatpush1.bf16.msra.mxu0 %v4781_v9  ;;  %v4874_v9 = vld [vmem:[#allocation9 + $0x150] ss:$8 sps:$4 sm:$0xff]  }
  0x77   :  { %490 = vmatprep.mubr.bf16.mxu0 %v4780_v51  ;;  %1205 = vmatprep.subr.bf16.mxu0 %v4786_v10  ;;  %v4849_v51 = vld [vmem:[#allocation7 + $0x284] ss:$8 sps:$4 sm:$0xff]   ;;  %v4879_v10 = vld [vmem:[#allocation9 + $0x14] ss:$8 sps:$4 sm:$0xff]  }
  0x78   :  { %843 = vmatprep.mubr.bf16.mxu1 %v5343_v11  ;;  %1858 = vmatpush1.bf16.msra.mxu1 %v4850_v54  ;;  %v4943_v54 = vld [vmem:[#allocation9 + $0x270] ss:$8 sps:$4 sm:$0xff]  }
  0x79   :  { %1859 = vmatprep.subr.bf16.mxu1 %v4855_v55  ;;  %v4948_v55 = vld [vmem:[#allocation9 + $0x184] ss:$8 sps:$4 sm:$0xff]  }
  0x7a   :  { %1206 = vmatpush1.bf16.msra.mxu0 %v4784_v12  ;;  %v4882_v12 = vld [vmem:[#allocation9 + $0x144] ss:$8 sps:$4 sm:$0xff]  }
  0x7b   :  { %1207 = vmatprep.subr.bf16.mxu0 %v4792_v13  ;;  %v4880_v13 = vld [vmem:[#allocation9 + $0x140] ss:$8 sps:$4 sm:$0xff]  }
  0x7c   :  { %1860 = vmatpush1.bf16.msra.mxu1 %v4853_v56  ;;  %v4951_v56 = vld [vmem:[#allocation9 + $0x264] ss:$8 sps:$4 sm:$0xff]  }
  0x7d   :  { %491 = vmatmul.mubr.bf16.gmra.mxu0 %v4778_v7  ;;  %1861 = vmatprep.subr.bf16.mxu1 %v4858_v57  ;;  %v4876_v7 = vld [vmem:[#allocation9 + $0x154] ss:$8 sps:$4 sm:$0xff]   ;;  %v4946_v57 = vld [vmem:[#allocation9 + $0x180] ss:$8 sps:$4 sm:$0xff]  }
  0x7e   :  { %844 = vmatmul.mubr.bf16.gmra.mxu1 %v5347_v14  ;;  %1208 = vmatpush1.bf16.msra.mxu0 %v4790_v1  ;;  %v4883_v1 = vld [vmem:[#allocation9] ss:$8 sps:$4 sm:$0xff]  }
  0x7f   :  { %500 = vmatprep.mubr.bf16.mxu0 %v5343_v11  ;;  %1209 = vmatprep.subr.bf16.mxu0 %v4795_v15  ;;  %v4888_v15 = vld [vmem:[#allocation9 + $0x134] ss:$8 sps:$4 sm:$0xff]  }
  0x80   :  { %853 = vmatprep.mubr.bf16.mxu1 %v5349_v16  ;;  %1862 = vmatpush1.bf16.msra.mxu1 %v4856_v58  ;;  %v4949_v58 = vld [vmem:[#allocation9 + $0x260] ss:$8 sps:$4 sm:$0xff]  }
  0x81   :  { %1863 = vmatprep.subr.bf16.mxu1 %v4861_v59  ;;  %v4954_v59 = vld [vmem:[#allocation9 + $0x254] ss:$8 sps:$4 sm:$0xff]  }
  0x82   :  { %1210 = vmatpush1.bf16.msra.mxu0 %v4793_v17  ;;  %v4891_v17 = vld [vmem:[#allocation9 + $0xf4] ss:$8 sps:$4 sm:$0xff]  }
  0x83   :  { %1211 = vmatprep.subr.bf16.mxu0 %v4801_v18  ;;  %v4889_v18 = vld [vmem:[#allocation9 + $0xf0] ss:$8 sps:$4 sm:$0xff]  }
  0x84   :  { %1864 = vmatpush1.bf16.msra.mxu1 %v4859_v60  ;;  %v4952_v60 = vld [vmem:[#allocation9 + $0x250] ss:$8 sps:$4 sm:$0xff]  }
  0x85   :  { %501 = vmatmul.mubr.bf16.gmra.mxu0 %v5347_v14  ;;  %1865 = vmatprep.subr.bf16.mxu1 %v4867_v63  ;;  %v4960_v63 = vld [vmem:[#allocation9 + $0x234] ss:$8 sps:$4 sm:$0xff]  }
  0x86   :  { %854 = vmatmul.mubr.bf16.gmra.mxu1 %v5354_v19  ;;  %1212 = vmatpush1.bf16.msra.mxu0 %v4799_v20  ;;  %v4892_v20 = vld [vmem:[#allocation9 + $0x120] ss:$8 sps:$4 sm:$0xff]  }
  0x87   :  { %510 = vmatprep.mubr.bf16.mxu0 %v5349_v16  ;;  %1213 = vmatprep.subr.bf16.mxu0 %v4804_v21  ;;  %v4897_v21 = vld [vmem:[#allocation9 + $0xe4] ss:$8 sps:$4 sm:$0xff]  }
  0x88   :  { %863 = vmatprep.mubr.bf16.mxu1 %v5356_v22  ;;  %1866 = vmatpush1.bf16.msra.mxu1 %v4865_v0  ;;  %v4958_v0 = vld [vmem:[#allocation9 + $0x230] ss:$8 sps:$4 sm:$0xff]  }
  0x89   :  { %1867 = vmatprep.subr.bf16.mxu1 %v4873_v5  ;;  %v4966_v5 = vld [vmem:[#allocation9 + $0x214] ss:$8 sps:$4 sm:$0xff]  }
  0x8a   :  { %1214 = vmatpush1.bf16.msra.mxu0 %v4802_v23  ;;  %v4900_v23 = vld [vmem:[#allocation9 + $0x114] ss:$8 sps:$4 sm:$0xff]  }
  0x8b   :  { %1215 = vmatprep.subr.bf16.mxu0 %v4810_v24  ;;  %v4898_v24 = vld [vmem:[#allocation9 + $0x110] ss:$8 sps:$4 sm:$0xff]  }
  0x8c   :  { %1868 = vmatpush1.bf16.msra.mxu1 %v4871_v6  ;;  %v4964_v6 = vld [vmem:[#allocation9 + $0x210] ss:$8 sps:$4 sm:$0xff]  }
  0x8d   :  { %511 = vmatmul.mubr.bf16.gmra.mxu0 %v5354_v19  ;;  %1869 = vmatprep.subr.bf16.mxu1 %v4879_v10  ;;  %v4972_v10 = vld [vmem:[#allocation9 + $0x2f4] ss:$8 sps:$4 sm:$0xff]  }
  0x8e   :  { %864 = vmatmul.mubr.bf16.gmra.mxu1 %v5362_v25  ;;  %1216 = vmatpush1.bf16.msra.mxu0 %v4808_v26  ;;  %v4901_v26 = vld [vmem:[#allocation9 + $0xd0] ss:$8 sps:$4 sm:$0xff]  }
  0x8f   :  { %520 = vmatprep.mubr.bf16.mxu0 %v5356_v22  ;;  %1217 = vmatprep.subr.bf16.mxu0 %v4813_v27  ;;  %v4906_v27 = vld [vmem:[#allocation9 + $0x104] ss:$8 sps:$4 sm:$0xff]  }
  0x90   :  { %873 = vmatprep.mubr.bf16.mxu1 %v5364_v28 }
  0x92   :  { %1218 = vmatpush1.bf16.msra.mxu0 %v4811_v29  ;;  %v4909_v29 = vld [vmem:[#allocation9 + $0xc4] ss:$8 sps:$4 sm:$0xff]  }
  0x93   :  { %1219 = vmatprep.subr.bf16.mxu0 %v4819_v30  ;;  %v4907_v30 = vld [vmem:[#allocation9 + $0xc0] ss:$8 sps:$4 sm:$0xff]  }
  0x95   :  { %521 = vmatmul.mubr.bf16.gmra.mxu0 %v5362_v25 }
  0x96   :  { %874 = vmatmul.mubr.bf16.gmra.mxu1 %v5370_v31  ;;  %1220 = vmatpush2.bf16.msra.mxu0 %v4817_v32  ;;  %v4910_v32 = vld [vmem:[#allocation9 + $0x1f0] ss:$8 sps:$4 sm:$0xff]  }
  0x97   :  { %530 = vmatprep.mubr.bf16.mxu0 %v5364_v28  ;;  %1221 = vmatprep.subr.bf16.mxu0 %v4822_v33  ;;  %v4915_v33 = vld [vmem:[#allocation9 + $0xb4] ss:$8 sps:$4 sm:$0xff]  }
  0x98   :  { %883 = vmatprep.mubr.bf16.mxu1 %v5372_v34 }
  0x9a   :  { %1222 = vmatpush2.bf16.msra.mxu0 %v4820_v35  ;;  %v4918_v35 = vld [vmem:[#allocation9 + $0x1e4] ss:$8 sps:$4 sm:$0xff]  }
  0x9b   :  { %1223 = vmatprep.subr.bf16.mxu0 %v4828_v36  ;;  %v4916_v36 = vld [vmem:[#allocation9 + $0x1e0] ss:$8 sps:$4 sm:$0xff]  }
  0x9d   :  { %531 = vmatmul.mubr.bf16.gmra.mxu0 %v5370_v31 }
  0x9e   :  { %884 = vmatmul.mubr.bf16.gmra.mxu1 %v5378_v37  ;;  %1224 = vmatpush2.bf16.msra.mxu0 %v4826_v38  ;;  %v4919_v38 = vld [vmem:[#allocation9 + $0xa0] ss:$8 sps:$4 sm:$0xff]  }
  0x9f   :  { %540 = vmatprep.mubr.bf16.mxu0 %v5372_v34  ;;  %1225 = vmatprep.subr.bf16.mxu0 %v4831_v39  ;;  %v4924_v39 = vld [vmem:[#allocation9 + $0x1d4] ss:$8 sps:$4 sm:$0xff]  }
  0xa0   :  { %893 = vmatprep.mubr.bf16.mxu1 %v5380_v40 }
  0xa2   :  { %1226 = vmatpush2.bf16.msra.mxu0 %v4829_v41  ;;  %v4927_v41 = vld [vmem:[#allocation9 + $0x94] ss:$8 sps:$4 sm:$0xff]  }
  0xa3   :  { %1227 = vmatprep.subr.bf16.mxu0 %v4837_v42  ;;  %v4925_v42 = vld [vmem:[#allocation9 + $0x90] ss:$8 sps:$4 sm:$0xff]  }
  0xa5   :  { %541 = vmatmul.mubr.bf16.gmra.mxu0 %v5378_v37 }
  0xa6   :  { %894 = vmatmul.mubr.bf16.gmra.mxu1 %v5386_v43  ;;  %1228 = vmatpush2.bf16.msra.mxu0 %v4835_v44  ;;  %v4928_v44 = vld [vmem:[#allocation9 + $0x1c0] ss:$8 sps:$4 sm:$0xff]  }
  0xa7   :  { %550 = vmatprep.mubr.bf16.mxu0 %v5380_v40  ;;  %1229 = vmatprep.subr.bf16.mxu0 %v4840_v45  ;;  %v4933_v45 = vld [vmem:[#allocation9 + $0x84] ss:$8 sps:$4 sm:$0xff]  }
  0xa8   :  { %903 = vmatprep.mubr.bf16.mxu1 %v5388_v46 }
  0xaa   :  { %1230 = vmatpush2.bf16.msra.mxu0 %v4838_v47  ;;  %v4936_v47 = vld [vmem:[#allocation9 + $0x1b4] ss:$8 sps:$4 sm:$0xff]  }
  0xab   :  { %1231 = vmatprep.subr.bf16.mxu0 %v4846_v48  ;;  %v4934_v48 = vld [vmem:[#allocation9 + $0x1b0] ss:$8 sps:$4 sm:$0xff]  }
  0xad   :  { %551 = vmatmul.mubr.bf16.gmra.mxu0 %v5386_v43 }
  0xae   :  { %904 = vmatmul.mubr.bf16.gmra.mxu1 %v5394_v49  ;;  %1232 = vmatpush2.bf16.msra.mxu0 %v4844_v50  ;;  %v4937_v50 = vld [vmem:[#allocation9 + $0x1a0] ss:$8 sps:$4 sm:$0xff]  }
  0xaf   :  { %1235 = vmatprep.mubr.bf16.mxu0 %v5343_v11  ;;  %1233 = vmatprep.subr.bf16.mxu0 %v4849_v51  ;;  %v4877_v11 = vld [vmem:[#allocation9 + $0x10] ss:$8 sps:$4 sm:$0xff]   ;;  %v4942_v51 = vld [vmem:[#allocation9 + $0x194] ss:$8 sps:$4 sm:$0xff]  }
  0xb0   :  { %1889 = vmatprep.mubr.bf16.mxu1 %v5335_v2  ;;  %1870 = vmatpush1.bf16.msra.mxu1 %v4877_v11  ;;  %v4970_v11 = vld [vmem:[#allocation9 + $0x2f0] ss:$8 sps:$4 sm:$0xff]  }
  0xb2   :  { %1234 = vmatpush2.bf16.msra.mxu0 %v4847_v52  ;;  %v4945_v52 = vld [vmem:[#allocation9 + $0x274] ss:$8 sps:$4 sm:$0xff]  }
  0xb3   :  { %2130 = vmatprep.subr.bf16.mxu0 %v4864_v61  ;;  %v4957_v61 = vld [vmem:[#allocation9 + $0x244] ss:$8 sps:$4 sm:$0xff]  }
  0xb5   :  { %1236 = vmatmul.mubr.bf16.vlgmr.msra.gmra.mxu0 %v5347_v14  ;;  %v4885_v14 = vld [vmem:[#allocation9 + $0x4] ss:$8 sps:$4 sm:$0xff]  }
  0xb6   :  { %1245 = vmatprep.mubr.bf16.mxu0 %v5349_v16  ;;  %2131 = vmatpush1.bf16.msra.mxu0 %v4862_v62  ;;  %v4886_v16 = vld [vmem:[#allocation9 + $0x130] ss:$8 sps:$4 sm:$0xff]   ;;  %v4955_v62 = vld [vmem:[#allocation9 + $0x240] ss:$8 sps:$4 sm:$0xff]  }
  0xb7   :  { %2132 = vmatprep.subr.bf16.mxu0 %v4870_v3  ;;  %1871 = vmatprep.subr.bf16.mxu1 %v4885_v14  ;;  %v4963_v3 = vld [vmem:[#allocation9 + $0x224] ss:$8 sps:$4 sm:$0xff]   ;;  %v4978_v14 = vld [vmem:[#allocation9 + $0x2d4] ss:$8 sps:$4 sm:$0xff]  }
  0xb8   :  { %1872 = vmatpush1.bf16.msra.mxu1 %v4883_v1  ;;  %v4976_v1 = vld [vmem:[#allocation9 + $0x2d0] ss:$8 sps:$4 sm:$0xff]  }
  0xb9   :  { %1873 = vmatprep.subr.bf16.mxu1 %v4891_v17  ;;  %v4984_v17 = vld [vmem:[#allocation9 + $0x2b4] ss:$8 sps:$4 sm:$0xff]  }
  0xba   :  { %2133 = vmatpush1.bf16.msra.mxu0 %v4868_v4  ;;  %v4961_v4 = vld [vmem:[#allocation9 + $0x220] ss:$8 sps:$4 sm:$0xff]  }
  0xbb   :  { %2134 = vmatprep.subr.bf16.mxu0 %v4876_v7  ;;  %v4969_v7 = vld [vmem:[#allocation9 + $0x204] ss:$8 sps:$4 sm:$0xff]  }
  0xbc   :  { %1874 = vmatpush2.bf16.msra.mxu1 %v4889_v18  ;;  %v4982_v18 = vld [vmem:[#allocation9 + $0x2b0] ss:$8 sps:$4 sm:$0xff]  }
  0xbd   :  { %1246 = vmatmul.mubr.bf16.gmra.mxu0 %v5354_v19  ;;  %v4894_v19 = vld [vmem:[#allocation9 + $0x124] ss:$8 sps:$4 sm:$0xff]   ;;  %1875 = vmatprep.subr.bf16.mxu1 %v4897_v21  ;;  %v4990_v21 = vld [vmem:[#allocation9 + $0x294] ss:$8 sps:$4 sm:$0xff]  }
  0xbe   :  { %1255 = vmatprep.mubr.bf16.mxu0 %v5356_v22  ;;  %2135 = vmatpush1.bf16.msra.mxu0 %v4874_v9  ;;  %v4895_v22 = vld [vmem:[#allocation9 + $0xe0] ss:$8 sps:$4 sm:$0xff]  }
  0xbf   :  { %2136 = vmatprep.subr.bf16.mxu0 %v4882_v12  ;;  %v4967_v9 = vld [vmem:[#allocation9 + $0x200] ss:$8 sps:$4 sm:$0xff]   ;;  %v4975_v12 = vld [vmem:[#allocation9 + $0x2e4] ss:$8 sps:$4 sm:$0xff]  }
  0xc0   :  { %1876 = vmatpush2.bf16.msra.mxu1 %v4895_v22  ;;  %v4988_v22 = vld [vmem:[#allocation9 + $0x290] ss:$8 sps:$4 sm:$0xff]  }
  0xc2   :  { %2137 = vmatpush1.bf16.msra.mxu0 %v4880_v13  ;;  %v4973_v13 = vld [vmem:[#allocation9 + $0x2e0] ss:$8 sps:$4 sm:$0xff]  }
  0xc3   :  { %2138 = vmatprep.subr.bf16.mxu0 %v4888_v15  ;;  %v4981_v15 = vld [vmem:[#allocation9 + $0x2c4] ss:$8 sps:$4 sm:$0xff]  }
  0xc5   :  { %1256 = vmatmul.mubr.bf16.gmra.mxu0 %v5362_v25  ;;  %v4903_v25 = vld [vmem:[#allocation9 + $0xd4] ss:$8 sps:$4 sm:$0xff]  }
  0xc6   :  { %1265 = vmatprep.mubr.bf16.mxu0 %v5364_v28  ;;  %2139 = vmatpush1.bf16.msra.mxu0 %v4886_v16  ;;  %v4904_v28 = vld [vmem:[#allocation9 + $0x100] ss:$8 sps:$4 sm:$0xff]  }
  0xc7   :  { %2140 = vmatprep.subr.bf16.mxu0 %v4894_v19  ;;  %1877 = vmatprep.subr.bf16.mxu1 %v4903_v25  ;;  %v4979_v16 = vld [vmem:[#allocation9 + $0x2c0] ss:$8 sps:$4 sm:$0xff]   ;;  %v4987_v19 = vld [vmem:[#allocation9 + $0x2a4] ss:$8 sps:$4 sm:$0xff]  }
  0xc8   :  { %1878 = vmatpush2.bf16.msra.mxu1 %v4901_v26 }
  0xc9   :  { %1879 = vmatprep.subr.bf16.mxu1 %v4909_v29 }
  0xca   :  { %2141 = vmatpush1.bf16.msra.mxu0 %v4892_v20  ;;  %v4985_v20 = vld [vmem:[#allocation9 + $0x2a0] ss:$8 sps:$4 sm:$0xff]  }
  0xcb   :  { %2142 = vmatprep.subr.bf16.mxu0 %v4900_v23 }
  0xcc   :  { %1880 = vmatpush2.bf16.msra.mxu1 %v4907_v30 }
  0xcd   :  { %1266 = vmatmul.mubr.bf16.gmra.mxu0 %v5370_v31  ;;  %v4912_v31 = vld [vmem:[#allocation9 + $0x1f4] ss:$8 sps:$4 sm:$0xff]   ;;  %1881 = vmatprep.subr.bf16.mxu1 %v4915_v33 }
  0xce   :  { %1275 = vmatprep.mubr.bf16.mxu0 %v5372_v34  ;;  %2143 = vmatpush1.bf16.msra.mxu0 %v4898_v24  ;;  %v4913_v34 = vld [vmem:[#allocation9 + $0xb0] ss:$8 sps:$4 sm:$0xff]  }
  0xcf   :  { %2144 = vmatprep.subr.bf16.mxu0 %v4906_v27  ;;  %v4993_v27 = vld [vmem:[#allocation9 + $0x284] ss:$8 sps:$4 sm:$0xff]  }
  0xd0   :  { %1882 = vmatpush2.bf16.msra.mxu1 %v4913_v34 }
  0xd2   :  { %2145 = vmatpush1.bf16.msra.mxu0 %v4904_v28  ;;  %v4991_v28 = vld [vmem:[#allocation9 + $0x280] ss:$8 sps:$4 sm:$0xff]  }
  0xd3   :  { %2146 = vmatprep.subr.bf16.mxu0 %v4912_v31 }
  0xd5   :  { %1276 = vmatmul.mubr.bf16.gmra.mxu0 %v5378_v37  ;;  %v4921_v37 = vld [vmem:[#allocation9 + $0xa4] ss:$8 sps:$4 sm:$0xff]  }
  0xd6   :  { %1285 = vmatprep.mubr.bf16.mxu0 %v5380_v40  ;;  %2147 = vmatpush2.bf16.msra.mxu0 %v4910_v32  ;;  %v4922_v40 = vld [vmem:[#allocation9 + $0x1d0] ss:$8 sps:$4 sm:$0xff]  }
  0xd7   :  { %2148 = vmatprep.subr.bf16.mxu0 %v4918_v35  ;;  %1883 = vmatprep.subr.bf16.mxu1 %v4921_v37 }
  0xd8   :  { %1884 = vmatpush2.bf16.msra.mxu1 %v4919_v38 }
  0xd9   :  { %1885 = vmatprep.subr.bf16.mxu1 %v4927_v41 }
  0xda   :  { %2149 = vmatpush2.bf16.msra.mxu0 %v4916_v36 }
  0xdb   :  { %2150 = vmatprep.subr.bf16.mxu0 %v4924_v39 }
  0xdc   :  { %1886 = vmatpush2.bf16.msra.mxu1 %v4925_v42 }
  0xdd   :  { %1286 = vmatmul.mubr.bf16.gmra.mxu0 %v5386_v43  ;;  %v4930_v43 = vld [vmem:[#allocation9 + $0x1c4] ss:$8 sps:$4 sm:$0xff]   ;;  %1887 = vmatprep.subr.bf16.mxu1 %v4933_v45 }
  0xde   :  { %1295 = vmatprep.mubr.bf16.mxu0 %v5388_v46  ;;  %2151 = vmatpush2.bf16.msra.mxu0 %v4922_v40  ;;  %v4931_v46 = vld [vmem:[#allocation9 + $0x80] ss:$8 sps:$4 sm:$0xff]  }
  0xdf   :  { %2152 = vmatprep.subr.bf16.mxu0 %v4930_v43 }
  0xe0   :  { %1888 = vmatpush2.bf16.msra.mxu1 %v4931_v46 }
  0xe1   :  { %2532 = vmatprep.subr.bf16.mxu1 %v4945_v52 }
  0xe2   :  { %2153 = vmatpush2.bf16.msra.mxu0 %v4928_v44 }
  0xe3   :  { %2154 = vmatprep.subr.bf16.mxu0 %v4936_v47  ;;  %1890 = vmatmul.mubr.bf16.vlgmr.msra.gmra.mxu1 %v5341_v8 }
  0xe4   :  { %2533 = vmatpush1.bf16.msra.mxu1 %v4943_v54 }
  0xe5   :  { %1296 = vmatmul.mubr.bf16.gmra.mxu0 %v5394_v49  ;;  %v4939_v49 = vld [vmem:[#allocation9 + $0x1a4] ss:$8 sps:$4 sm:$0xff]   ;;  %2534 = vmatprep.subr.bf16.mxu1 %v4951_v56 }
  0xe6   :  { %1305 = vmatprep.mubr.bf16.mxu0 %v5335_v2  ;;  %2155 = vmatpush2.bf16.msra.mxu0 %v4934_v48 }
  0xe7   :  { %2156 = vmatprep.subr.bf16.mxu0 %v4939_v49 }
  0xe8   :  { %2535 = vmatpush1.bf16.msra.mxu1 %v4949_v58 }
  0xe9   :  { %2536 = vmatprep.subr.bf16.mxu1 %v4954_v59 }
  0xea   :  { %2157 = vmatpush2.bf16.msra.mxu0 %v4937_v50 }
  0xeb   :  { %2158 = vmatprep.subr.bf16.mxu0 %v4942_v51 }
  0xec   :  { %2537 = vmatpush1.bf16.msra.mxu1 %v4952_v60 }
  0xed   :  { %1306 = vmatmul.mubr.bf16.gmra.mxu0 %v5341_v8  ;;  %2538 = vmatprep.subr.bf16.mxu1 %v4957_v61 }
  0xee   :  { %2159 = vmatpush2.bf16.msra.mxu0 %v4940_v53 }
  0xef   :  { %2160 = vmatprep.subr.bf16.mxu0 %v4948_v55 }
  0xf0   :  { %2539 = vmatpush1.bf16.msra.mxu1 %v4955_v62 }
  0xf1   :  { %2540 = vmatprep.subr.bf16.mxu1 %v4960_v63 }
  0xf2   :  { %2161 = vmatpush2.bf16.msra.mxu0 %v4946_v57 }
  0xf4   :  { %2541 = vmatpush1.bf16.msra.mxu1 %v4958_v0 }
  0xf5   :  { %2542 = vmatprep.subr.bf16.mxu1 %v4963_v3 }
  0xf8   :  { %2543 = vmatpush1.bf16.msra.mxu1 %v4961_v4  ;;  %v1350_v4 = vlaneseq }
  0xf9   :  { %2544 = vmatprep.subr.bf16.mxu1 %v4966_v5 }
  0xfc   :  { %2545 = vmatpush1.bf16.msra.mxu1 %v4964_v6 }
  0xfd   :  { %2546 = vmatprep.subr.bf16.mxu1 %v4969_v7 }
 0x100   :  { %2547 = vmatpush1.bf16.msra.mxu1 %v4967_v9  ;;  %v1351_v9 = vshrl.u32 %v1350_v4, 7 }
 0x101   :  { %2548 = vmatprep.subr.bf16.mxu1 %v4972_v10 }
 0x104   :  { %2549 = vmatpush2.bf16.msra.mxu1 %v4970_v11 }
 0x105   :  { %2550 = vmatprep.subr.bf16.mxu1 %v4975_v12 }
 0x108   :  { %2551 = vmatpush2.bf16.msra.mxu1 %v4973_v13  ;;  %v5490_v13 = vsub.s32 0, %v1351_v9 }
 0x109   :  { %2552 = vmatprep.subr.bf16.mxu1 %v4978_v14 }
 0x10c   :  { %2553 = vmatpush2.bf16.msra.mxu1 %v4976_v1 }
 0x10d   :  { %2554 = vmatprep.subr.bf16.mxu1 %v4981_v15  ;;  %v1348_v15 = vld [vmem:[%s6088_s2] sm:$0x3] }
 0x110   :  { %2555 = vmatpush2.bf16.msra.mxu1 %v4979_v16 }
 0x111   :  { %2556 = vmatprep.subr.bf16.mxu1 %v4984_v17  ;;  %v5499_v17 = vsub.s32 1, %v1351_v9 }
 0x113   :  { %v5507_v2 = vrot.slane %v1348_v15, %v5499_v17 }
 0x114   :  { %2557 = vmatpush2.bf16.msra.mxu1 %v4982_v18 }
 0x115   :  { %2558 = vmatprep.subr.bf16.mxu1 %v4987_v19  ;;  %v4996_v19 = vld [vmem:[#allocation10 + $0x74] ss:$8 sps:$4 sm:$0xff]  }
 0x116   :  { %3186 = vmatprep.subr.bf16.mxu0 %v4996_v19 }
 0x118   :  { %2559 = vmatpush2.bf16.msra.mxu1 %v4985_v20 }
 0x119   :  { %2560 = vmatprep.subr.bf16.mxu1 %v4990_v21 }
 0x11c   :  { %2561 = vmatpush2.bf16.msra.mxu1 %v4988_v22  ;;  %v5502_v22 = vrot.slane %v1348_v15, %v5490_v13 }
 0x11d   :  { %2562 = vmatprep.subr.bf16.mxu1 %v4993_v27 }
 0x120   :  { %2563 = vmatpush2.bf16.msra.mxu1 %v4991_v28 }
 0x135   :  { %v482_v23 = vpop.f32.mrf.mxu0 }
 0x136   :  { %v835_v24 = vpop.f32.mrf.mxu1 }
 0x137   :  { %v484_v25 = vpop.f32.mrf.mxu0  ;;  %v836_v16 = vadd.f32 %v835_v24, %v482_v23 }
 0x138   :  { %v837_v26 = vpop.f32.mrf.mxu1 }
 0x139   :  { %v486_v29 = vpop.f32.mrf.mxu0  ;;  %v838_v20 = vadd.f32 %v837_v26, %v484_v25 }
 0x13a   :  { %v839_v30 = vpop.f32.mrf.mxu1 }
 0x13b   :  { %v488_v31 = vpop.f32.mrf.mxu0  ;;  %v840_v4 = vadd.f32 %v839_v30, %v486_v29 }
 0x13c   :  { %v841_v33 = vpop.f32.mrf.mxu1 }
 0x13d   :  { %v5416_v32 = vpop.f32.mrf.mxu0  ;;  %v842_v23 = vadd.f32 %v841_v33, %v488_v31 }
 0x13e   :  { %v845_v36 = vpop.f32.mrf.mxu1 }
 0x13f   :  { %v5418_v34 = vpop.f32.mrf.mxu0  ;;  %v846_v26 = vadd.f32 %v845_v36, %v5416_v32 }
 0x140   :  { %v847_v39 = vpop.f32.mrf.mxu1 }
 0x141   :  { %v5420_v35 = vpop.f32.mrf.mxu0  ;;  %v848_v29 = vadd.f32 %v847_v39, %v5418_v34 }
 0x142   :  { %v5430_v42 = vpop.f32.mrf.mxu1 }
 0x143   :  { %v5422_v37 = vpop.f32.mrf.mxu0 }
 0x144   :  { %v5436_v45 = vpop.f32.mrf.mxu1 }
 0x145   :  { %v5424_v38 = vpop.f32.mrf.mxu0  ;;  %v852_v34 = vadd.f32 %v5436_v45, %v5422_v37 }
 0x146   :  { %v5442_v48 = vpop.f32.mrf.mxu1 }
 0x147   :  { %v5426_v40 = vpop.f32.mrf.mxu0 }
 0x148   :  { %v5448_v51 = vpop.f32.mrf.mxu1 }
 0x149   :  { %v5428_v41 = vpop.f32.mrf.mxu0  ;;  %v858_v37 = vadd.f32 %v5448_v51, %v5426_v40 }
 0x14a   :  { %v5454_v54 = vpop.f32.mrf.mxu1 }
 0x14b   :  { %v5432_v43 = vpop.f32.mrf.mxu0 }
 0x14c   :  { %v5460_v57 = vpop.f32.mrf.mxu1 }
 0x14d   :  { %v5434_v44 = vpop.f32.mrf.mxu0 }
 0x14e   :  { %v5466_v60 = vpop.f32.mrf.mxu1 }
 0x14f   :  { %v5438_v46 = vpop.f32.mrf.mxu0 }
 0x150   :  { %v5472_v63 = vpop.f32.mrf.mxu1 }
 0x151   :  { %v5440_v47 = vpop.f32.mrf.mxu0 }
 0x152   :  { %v5478_v5 = vpop.f32.mrf.mxu1 }
 0x153   :  { %v5444_v49 = vpop.f32.mrf.mxu0 }
 0x154   :  { %v5484_v10 = vpop.f32.mrf.mxu1 }
 0x155   :  { %v5446_v50 = vpop.f32.mrf.mxu0 }
 0x156   :  { %v5492_v14 = vpop.f32.mrf.mxu1 }
 0x157   :  { %v5450_v52 = vpop.f32.mrf.mxu0 }
 0x158   :  { %v5504_v27 = vpop.f32.mrf.mxu1 }
 0x159   :  { %v5452_v53 = vpop.f32.mrf.mxu0 }
 0x15b   :  { %v5456_v55 = vpop.f32.mrf.mxu0 }
 0x15d   :  { %v5458_v56 = vpop.f32.mrf.mxu0 }
 0x15f   :  { %v5462_v58 = vpop.f32.mrf.mxu0 }
 0x161   :  { %v5464_v59 = vpop.f32.mrf.mxu0 }
 0x163   :  { %v5468_v61 = vpop.f32.mrf.mxu0 }
 0x165   :  { %v5470_v62 = vpop.f32.mrf.mxu0 }
 0x167   :  { %v5474_v0 = vpop.f32.mrf.mxu0 }
 0x169   :  { %v5476_v3 = vpop.f32.mrf.mxu0 }
 0x16b   :  { %v5480_v6 = vpop.f32.mrf.mxu0 }
 0x16d   :  { %v5482_v7 = vpop.f32.mrf.mxu0 }
 0x16f   :  { %v5486_v11 = vpop.f32.mrf.mxu0 }
 0x171   :  { %v5488_v12 = vpop.f32.mrf.mxu0 }
 0x172   :  { %6104 = vst [vmem:[#allocation19_spill] sm:$0xff] %v5488_v12  ;;  %v5510_v12 = vpop.f32.mrf.mxu1 }
 0x173   :  { %v5494_v1 = vpop.f32.mrf.mxu0 }
 0x174   :  { %6105 = vst [vmem:[#allocation20_spill] sm:$0xff] %v5494_v1 }
 0x175   :  { %v1237_v18 = vpop.f32.mrf.mxu0 }
 0x176   :  { %v1316_v21 = vadd.f32 %v1237_v18, %v836_v16 }
 0x177   :  { %v1239_v28 = vpop.f32.mrf.mxu0 }
 0x178   :  { %v1317_v8 = vadd.f32 %v1239_v28, %v838_v20  ;;  %v1360_v24 = vadd.f32 %v5502_v22, %v1316_v21  ;;  %v5519_v21 = vpop.f32.mrf.mxu1 }
 0x179   :  { %v1241_v1 = vpop.f32.mrf.mxu0 }
 0x17a   :  { %v1318_v9 = vadd.f32 %v1241_v1, %v840_v4  ;;  %v1361_v16 = vadd.f32 %v5507_v2, %v1317_v8  ;;  %v1392_v15 = vmax.f32 %v1360_v24, 0.0  ;;  %v850_v1 = vadd.f32 %v5430_v42, %v5420_v35  ;;  %v5526_v35 = vpop.f32.mrf.mxu1 }
 0x17b   :  { %v1243_v25 = vpop.f32.mrf.mxu0 }
 0x17c   :  { %v1362_v18 = vadd.f32 %v5502_v22, %v1318_v9  ;;  %v1319_v19 = vadd.f32 %v1243_v25, %v842_v23  ;;  %v1393_v32 = vmax.f32 %v1361_v16, 0.0  ;;  %v4994_v25 = vld [vmem:[#allocation10 + $0x70] ss:$8 sps:$4 sm:$0xff]  }
 0x17d   :  { %v1247_v30 = vpop.f32.mrf.mxu0 }
 0x17e   :  { %v1394_v20 = vmax.f32 %v1362_v18, 0.0  ;;  %v1363_v31 = vadd.f32 %v5507_v2, %v1319_v19  ;;  %v1320_v33 = vadd.f32 %v1247_v30, %v846_v26  ;;  %v856_v26 = vadd.f32 %v5442_v48, %v5424_v38  ;;  %v4999_v18 = vld [vmem:[#allocation10 + $0x64] ss:$8 sps:$4 sm:$0xff]  }
 0x17f   :  { %v1249_v28 = vpop.f32.mrf.mxu0 }
 0x180   :  { %v1395_v36 = vmax.f32 %v1363_v31, 0.0  ;;  %v1321_v8 = vadd.f32 %v1249_v28, %v848_v29  ;;  %v1424_v4 = vpack.c.bf16 %v1394_v20, %v1392_v15  ;;  %v1364_v39 = vadd.f32 %v5502_v22, %v1320_v33  ;;  %v4997_v20 = vld [vmem:[#allocation10 + $0x60] ss:$8 sps:$4 sm:$0xff]   ;;  %v5535_v33 = vpop.f32.mrf.mxu1 }
 0x181   :  { %v1251_v9 = vpop.f32.mrf.mxu0  ;;  %v860_v31 = vadd.f32 %v5454_v54, %v5428_v41  ;;  %v866_v41 = vadd.f32 %v5466_v60, %v5434_v44 }
 0x182   :  { %v1322_v23 = vadd.f32 %v1251_v9, %v850_v1  ;;  %v1425_v24 = vpack.c.bf16 %v1395_v36, %v1393_v32  ;;  %v1365_v16 = vadd.f32 %v5507_v2, %v1321_v8  ;;  %v1396_v30 = vmax.f32 %v1364_v39, 0.0  ;;  %v5546_v54 = vpop.f32.mrf.mxu1 }
 0x183   :  { %v1253_v42 = vpop.f32.mrf.mxu0  ;;  %v862_v8 = vadd.f32 %v5460_v57, %v5432_v43  ;;  %v868_v43 = vadd.f32 %v5472_v63, %v5438_v46 }
 0x184   :  { %v1366_v19 = vadd.f32 %v5502_v22, %v1322_v23  ;;  %v1323_v29 = vadd.f32 %v1253_v42, %v852_v34  ;;  %1899 = vmatprep.mubr.bf16.mxu1 %v1425_v24  ;;  %2162 = vmatprep.mubr.bf16.mxu0 %v1425_v24  ;;  %v1397_v28 = vmax.f32 %v1365_v16, 0.0  ;;  %v5559_v16 = vpop.f32.mrf.mxu1 }
 0x185   :  { %v1257_v45 = vpop.f32.mrf.mxu0  ;;  %1900 = vmatmul.mubr.bf16.gmra.mxu1 %v1424_v4  ;;  %2163 = vmatmul.mubr.bf16.vlgmr.msra.gmra.mxu0 %v1424_v4 }
 0x186   :  { %v1398_v15 = vmax.f32 %v1366_v19, 0.0  ;;  %v1367_v38 = vadd.f32 %v5507_v2, %v1323_v29  ;;  %v1324_v48 = vadd.f32 %v1257_v45, %v856_v26  ;;  %3187 = vmatpush1.bf16.msra.mxu0 %v4994_v25 }
 0x187   :  { %v1259_v1 = vpop.f32.mrf.mxu0  ;;  %3188 = vmatprep.subr.bf16.mxu0 %v4999_v18  ;;  %v870_v18 = vadd.f32 %v5478_v5, %v5440_v47  ;;  %v876_v47 = vadd.f32 %v5492_v14, %v5446_v50  ;;  %v895_v5 = vpop.f32.mrf.mxu1 }
 0x188   :  { %v1399_v32 = vmax.f32 %v1367_v38, 0.0  ;;  %v1325_v40 = vadd.f32 %v1259_v1, %v858_v37  ;;  %v5537_v51 = vpack.c.bf16 %v1398_v15, %v1396_v30  ;;  %v1368_v4 = vadd.f32 %v5502_v22, %v1324_v48 }
 0x189   :  { %v1261_v36 = vpop.f32.mrf.mxu0  ;;  %v872_v30 = vadd.f32 %v5484_v10, %v5444_v49  ;;  %v878_v49 = vadd.f32 %v5504_v27, %v5450_v52  ;;  %v882_v27 = vadd.f32 %v5519_v21, %v5456_v55  ;;  %v888_v55 = vadd.f32 %v5535_v33, %v5462_v58 }
 0x18a   :  { %v1326_v9 = vadd.f32 %v1261_v36, %v860_v31  ;;  %v5542_v34 = vpack.c.bf16 %v1399_v32, %v1397_v28  ;;  %3189 = vmatpush1.bf16.msra.mxu0 %v4997_v20  ;;  %v1369_v23 = vadd.f32 %v5507_v2, %v1325_v40  ;;  %v1400_v44 = vmax.f32 %v1368_v4, 0.0 }
 0x18b   :  { %v1263_v39 = vpop.f32.mrf.mxu0  ;;  %v880_v36 = vadd.f32 %v5510_v12, %v5452_v53  ;;  %v892_v33 = vadd.f32 %v5559_v16, %v5468_v61 }
 0x18c   :  { %v1370_v24 = vadd.f32 %v5502_v22, %v1326_v9  ;;  %v1327_v25 = vadd.f32 %v1263_v39, %v862_v8  ;;  %1909 = vmatprep.mubr.bf16.mxu1 %v5542_v34  ;;  %2172 = vmatprep.mubr.bf16.mxu0 %v5542_v34  ;;  %v1401_v29 = vmax.f32 %v1369_v23, 0.0  ;;  %v897_v8 = vpop.f32.mrf.mxu1 }
 0x18d   :  { %v1267_v57 = vpop.f32.mrf.mxu0  ;;  %1910 = vmatmul.mubr.bf16.gmra.mxu1 %v5537_v51  ;;  %2173 = vmatmul.mubr.bf16.gmra.mxu0 %v5537_v51  ;;  %v898_v61 = vadd.f32 %v897_v8, %v5474_v0 }
 0x18e   :  { %v1402_v60 = vmax.f32 %v1370_v24, 0.0  ;;  %v1371_v26 = vadd.f32 %v5507_v2, %v1327_v25  ;;  %v1328_v42 = vadd.f32 %v1267_v57, %v866_v41  ;;  %v886_v57 = vadd.f32 %v5526_v35, %v5458_v56  ;;  %v899_v53 = vpop.f32.mrf.mxu1 }
 0x18f   :  { %v1269_v19 = vpop.f32.mrf.mxu0 }
 0x190   :  { %v1403_v37 = vmax.f32 %v1371_v26, 0.0  ;;  %v1329_v45 = vadd.f32 %v1269_v19, %v868_v43  ;;  %v5561_v46 = vpack.c.bf16 %v1402_v60, %v1400_v44  ;;  %v1372_v15 = vadd.f32 %v5502_v22, %v1328_v42 }
 0x191   :  { %v1271_v63 = vpop.f32.mrf.mxu0  ;;  %v890_v19 = vadd.f32 %v5546_v54, %v5464_v59 }
 0x192   :  { %v1330_v38 = vadd.f32 %v1271_v63, %v870_v18  ;;  %v5566_v48 = vpack.c.bf16 %v1403_v37, %v1401_v29  ;;  %v1373_v31 = vadd.f32 %v5507_v2, %v1329_v45  ;;  %v1404_v50 = vmax.f32 %v1372_v15, 0.0  ;;  %v901_v29 = vpop.f32.mrf.mxu1 }
 0x193   :  { %v1273_v20 = vpop.f32.mrf.mxu0  ;;  %v902_v8 = vadd.f32 %v901_v29, %v5480_v6 }
 0x194   :  { %v1374_v1 = vadd.f32 %v5502_v22, %v1330_v38  ;;  %v1331_v28 = vadd.f32 %v1273_v20, %v872_v30  ;;  %1919 = vmatprep.mubr.bf16.mxu1 %v5566_v48  ;;  %2182 = vmatprep.mubr.bf16.mxu0 %v5566_v48  ;;  %v1405_v9 = vmax.f32 %v1373_v31, 0.0  ;;  %v896_v31 = vadd.f32 %v895_v5, %v5470_v62 }
 0x195   :  { %v1277_v10 = vpop.f32.mrf.mxu0  ;;  %1920 = vmatmul.mubr.bf16.gmra.mxu1 %v5561_v46  ;;  %2183 = vmatmul.mubr.bf16.gmra.mxu0 %v5561_v46 }
 0x196   :  { %v1406_v14 = vmax.f32 %v1374_v1, 0.0  ;;  %v1375_v32 = vadd.f32 %v5507_v2, %v1331_v28  ;;  %v1332_v40 = vadd.f32 %v1277_v10, %v876_v47  ;;  %v905_v1 = vpop.f32.mrf.mxu1 }
 0x197   :  { %v1279_v4 = vpop.f32.mrf.mxu0 }
 0x198   :  { %v1407_v41 = vmax.f32 %v1375_v32, 0.0  ;;  %v1333_v39 = vadd.f32 %v1279_v4, %v878_v49  ;;  %v5581_v23 = vpack.c.bf16 %v1406_v14, %v1404_v50  ;;  %v1376_v24 = vadd.f32 %v5502_v22, %v1332_v40  ;;  %v907_v32 = vpop.f32.mrf.mxu1 }
 0x199   :  { %v1281_v52 = vpop.f32.mrf.mxu0  ;;  %v900_v14 = vadd.f32 %v899_v53, %v5476_v3  ;;  %v908_v6 = vadd.f32 %v907_v32, %v5486_v11  ;;  %v5017_v32 = vld [vmem:[#allocation10 + $0x24] ss:$8 sps:$4 sm:$0xff]  }
 0x19a   :  { %v1334_v25 = vadd.f32 %v1281_v52, %v880_v36  ;;  %v5586_v43 = vpack.c.bf16 %v1407_v41, %v1405_v9  ;;  %v1377_v44 = vadd.f32 %v5507_v2, %v1333_v39  ;;  %v1408_v56 = vmax.f32 %v1376_v24, 0.0 }
 0x19b   :  { %v1283_v12 = vpop.f32.mrf.mxu0  ;;  %v906_v24 = vadd.f32 %v905_v1, %v5482_v7 }
 0x19c   :  { %v1378_v60 = vadd.f32 %v5502_v22, %v1334_v25  ;;  %v1335_v26 = vadd.f32 %v1283_v12, %v882_v27  ;;  %1929 = vmatprep.mubr.bf16.mxu1 %v5586_v43  ;;  %2192 = vmatprep.mubr.bf16.mxu0 %v5586_v43  ;;  %v1409_v45 = vmax.f32 %v1377_v44, 0.0  ;;  %v909_v25 = vpop.f32.mrf.mxu1 }
 0x19d   :  { %v1287_v21 = vpop.f32.mrf.mxu0  ;;  %1930 = vmatmul.mubr.bf16.gmra.mxu1 %v5581_v23  ;;  %2193 = vmatmul.mubr.bf16.gmra.mxu0 %v5581_v23 }
 0x19e   :  { %v1410_v35 = vmax.f32 %v1378_v60, 0.0  ;;  %v1379_v42 = vadd.f32 %v5507_v2, %v1335_v26  ;;  %v1336_v18 = vadd.f32 %v1287_v21, %v886_v57  ;;  %v6106_v21 = vld [vmem:[#allocation19_spill] sm:$0xff] }
 0x19f   :  { %v1289_v37 = vpop.f32.mrf.mxu0 }
 0x1a0   :  { %v1411_v63 = vmax.f32 %v1379_v42, 0.0  ;;  %v1337_v30 = vadd.f32 %v1289_v37, %v888_v55  ;;  %v5601_v15 = vpack.c.bf16 %v1410_v35, %v1408_v56  ;;  %v1380_v38 = vadd.f32 %v5502_v22, %v1336_v18  ;;  %v911_v35 = vpop.f32.mrf.mxu1 }
 0x1a1   :  { %v1291_v58 = vpop.f32.mrf.mxu0  ;;  %v910_v56 = vadd.f32 %v909_v25, %v6106_v21  ;;  %v5038_v25 = vld [vmem:[#allocation10 + $0x124] ss:$8 sps:$4 sm:$0xff]   ;;  %v5056_v21 = vld [vmem:[#allocation10 + $0x1f4] ss:$8 sps:$4 sm:$0xff]  }
 0x1a2   :  { %v1338_v47 = vadd.f32 %v1291_v58, %v890_v19  ;;  %v5606_v20 = vpack.c.bf16 %v1411_v63, %v1409_v45  ;;  %v1381_v54 = vadd.f32 %v5507_v2, %v1337_v30  ;;  %v1412_v10 = vmax.f32 %v1380_v38, 0.0  ;;  %v6107_v45 = vld [vmem:[#allocation20_spill] sm:$0xff] }
 0x1a3   :  { %v1293_v59 = vpop.f32.mrf.mxu0  ;;  %v912_v63 = vadd.f32 %v911_v35, %v6107_v45  ;;  %v5059_v35 = vld [vmem:[#allocation10 + $0xb4] ss:$8 sps:$4 sm:$0xff]   ;;  %v5066_v45 = vld [vmem:[#allocation10 + $0x1d0] ss:$8 sps:$4 sm:$0xff]  }
 0x1a4   :  { %v1382_v28 = vadd.f32 %v5502_v22, %v1338_v47  ;;  %v1339_v49 = vadd.f32 %v1293_v59, %v892_v33  ;;  %1939 = vmatprep.mubr.bf16.mxu1 %v5606_v20  ;;  %2202 = vmatprep.mubr.bf16.mxu0 %v5606_v20  ;;  %v1413_v36 = vmax.f32 %v1381_v54, 0.0 }
 0x1a5   :  { %v1297_v16 = vpop.f32.mrf.mxu0  ;;  %1940 = vmatmul.mubr.bf16.gmra.mxu1 %v5601_v15  ;;  %2203 = vmatmul.mubr.bf16.gmra.mxu0 %v5601_v15 }
 0x1a6   :  { %v1414_v62 = vmax.f32 %v1382_v28, 0.0  ;;  %v1383_v5 = vadd.f32 %v5507_v2, %v1339_v49  ;;  %v1340_v50 = vadd.f32 %v1297_v16, %v896_v31 }
 0x1a7   :  { %v1299_v40 = vpop.f32.mrf.mxu0 }
 0x1a8   :  { %v1415_v4 = vmax.f32 %v1383_v5, 0.0  ;;  %v1341_v9 = vadd.f32 %v1299_v40, %v898_v61  ;;  %v5618_v41 = vpack.c.bf16 %v1414_v62, %v1412_v10  ;;  %v1384_v39 = vadd.f32 %v5502_v22, %v1340_v50  ;;  %v6108_v10 = vld [vmem:[#allocation17_spill] sm:$0xff]  ;;  %v5008_v50 = vld [vmem:[#allocation10 + $0x174] ss:$8 sps:$4 sm:$0xff]  }
 0x1a9   :  { %v1301_v0 = vpop.f32.mrf.mxu0  ;;  %v5005_v62 = vld [vmem:[#allocation10 + $0x44] ss:$8 sps:$4 sm:$0xff]   ;;  %v5003_v5 = vld [vmem:[#allocation10 + $0x40] ss:$8 sps:$4 sm:$0xff]   ;;  %3459 = vmatprep.subr.bf16.mxu1 %v5008_v50  ;;  %v5098_v50 = vld [vmem:[#allocation10 + $0x254] ss:$8 sps:$4 sm:$0xff]  }
 0x1aa   :  { %v1342_v52 = vadd.f32 %v1301_v0, %v900_v14  ;;  %v5622_v27 = vpack.c.bf16 %v1415_v4, %v1413_v36  ;;  %v1385_v3 = vadd.f32 %v5507_v2, %v1341_v9  ;;  %v1416_v60 = vmax.f32 %v1384_v39, 0.0  ;;  %v5006_v14 = vld [vmem:[#allocation10 + $0x170] ss:$8 sps:$4 sm:$0xff]   ;;  %v5015_v40 = vld [vmem:[#allocation10 + $0x20] ss:$8 sps:$4 sm:$0xff]  }
 0x1ab   :  { %v1303_v57 = vpop.f32.mrf.mxu0  ;;  %v5020_v36 = vld [vmem:[#allocation10 + $0x154] ss:$8 sps:$4 sm:$0xff]   ;;  %v5018_v4 = vld [vmem:[#allocation10 + $0x150] ss:$8 sps:$4 sm:$0xff]   ;;  %v5026_v9 = vld [vmem:[#allocation10 + $0x144] ss:$8 sps:$4 sm:$0xff]  }
 0x1ac   :  { %v1386_v53 = vadd.f32 %v5502_v22, %v1342_v52  ;;  %v1343_v12 = vadd.f32 %v1303_v57, %v902_v8  ;;  %1949 = vmatprep.mubr.bf16.mxu1 %v5622_v27  ;;  %2212 = vmatprep.mubr.bf16.mxu0 %v5622_v27  ;;  %v1417_v18 = vmax.f32 %v1385_v3, 0.0  ;;  %v5024_v0 = vld [vmem:[#allocation10 + $0x140] ss:$8 sps:$4 sm:$0xff]   ;;  %v5029_v8 = vld [vmem:[#allocation10 + $0x4] ss:$8 sps:$4 sm:$0xff]  }
 0x1ad   :  { %v1307_v44 = vpop.f32.mrf.mxu0  ;;  %1950 = vmatmul.mubr.bf16.gmra.mxu1 %v5618_v41  ;;  %2213 = vmatmul.mubr.bf16.gmra.mxu0 %v5618_v41  ;;  %v5027_v39 = vld [vmem:[#allocation10] ss:$8 sps:$4 sm:$0xff]   ;;  %v5032_v52 = vld [vmem:[#allocation10 + $0x134] ss:$8 sps:$4 sm:$0xff]   ;;  %v5041_v3 = vld [vmem:[#allocation10 + $0xe4] ss:$8 sps:$4 sm:$0xff]  }
 0x1ae   :  { %v1418_v7 = vmax.f32 %v1386_v53, 0.0  ;;  %v1387_v26 = vadd.f32 %v5507_v2, %v1343_v12  ;;  %v1344_v55 = vadd.f32 %v1307_v44, %v906_v24  ;;  %v5030_v24 = vld [vmem:[#allocation10 + $0x130] ss:$8 sps:$4 sm:$0xff]   ;;  %v5036_v57 = vld [vmem:[#allocation10 + $0x120] ss:$8 sps:$4 sm:$0xff]  }
 0x1af   :  { %v1309_v42 = vpop.f32.mrf.mxu0  ;;  %v5039_v53 = vld [vmem:[#allocation10 + $0xe0] ss:$8 sps:$4 sm:$0xff]   ;;  %v5044_v12 = vld [vmem:[#allocation10 + $0x114] ss:$8 sps:$4 sm:$0xff]   ;;  %v5045_v44 = vld [vmem:[#allocation10 + $0xd0] ss:$8 sps:$4 sm:$0xff]  }
 0x1b0   :  { %v1419_v19 = vmax.f32 %v1387_v26, 0.0  ;;  %v1345_v29 = vadd.f32 %v1309_v42, %v908_v6  ;;  %v5634_v37 = vpack.c.bf16 %v1418_v7, %v1416_v60  ;;  %v1388_v30 = vadd.f32 %v5502_v22, %v1344_v55  ;;  %v5042_v6 = vld [vmem:[#allocation10 + $0x110] ss:$8 sps:$4 sm:$0xff]   ;;  %v5050_v60 = vld [vmem:[#allocation10 + $0x104] ss:$8 sps:$4 sm:$0xff]  }
 0x1b1   :  { %v1311_v11 = vpop.f32.mrf.mxu0  ;;  %v5048_v7 = vld [vmem:[#allocation10 + $0x100] ss:$8 sps:$4 sm:$0xff]   ;;  %v5053_v26 = vld [vmem:[#allocation10 + $0xc4] ss:$8 sps:$4 sm:$0xff]   ;;  %v5057_v42 = vld [vmem:[#allocation10 + $0xb0] ss:$8 sps:$4 sm:$0xff]  }
 0x1b2   :  { %v1346_v58 = vadd.f32 %v1311_v11, %v910_v56  ;;  %v5638_v33 = vpack.c.bf16 %v1419_v19, %v1417_v18  ;;  %v1389_v47 = vadd.f32 %v5507_v2, %v1345_v29  ;;  %v1420_v59 = vmax.f32 %v1388_v30, 0.0  ;;  %v5051_v55 = vld [vmem:[#allocation10 + $0xc0] ss:$8 sps:$4 sm:$0xff]   ;;  %v5054_v56 = vld [vmem:[#allocation10 + $0x1f0] ss:$8 sps:$4 sm:$0xff]  }
 0x1b3   :  { %v1313_v38 = vpop.f32.mrf.mxu0  ;;  %v5062_v18 = vld [vmem:[#allocation10 + $0x1e4] ss:$8 sps:$4 sm:$0xff]   ;;  %v5060_v19 = vld [vmem:[#allocation10 + $0x1e0] ss:$8 sps:$4 sm:$0xff]   ;;  %v5068_v11 = vld [vmem:[#allocation10 + $0x1d4] ss:$8 sps:$4 sm:$0xff]  }
 0x1b4   :  { %v1390_v31 = vadd.f32 %v5502_v22, %v1346_v58  ;;  %v1347_v1 = vadd.f32 %v1313_v38, %v912_v63  ;;  %1959 = vmatprep.mubr.bf16.mxu1 %v5638_v33  ;;  %2222 = vmatprep.mubr.bf16.mxu0 %v5638_v33  ;;  %v1421_v49 = vmax.f32 %v1389_v47, 0.0  ;;  %v5065_v29 = vld [vmem:[#allocation10 + $0xa4] ss:$8 sps:$4 sm:$0xff]   ;;  %v6109_v63 = vld [vmem:[#allocation18_spill] sm:$0xff]  ;;  %v5072_v38 = vld [vmem:[#allocation10 + $0x1c0] ss:$8 sps:$4 sm:$0xff]  }
 0x1b5   :  { %1960 = vmatmul.mubr.bf16.gmra.mxu1 %v5634_v37  ;;  %2223 = vmatmul.mubr.bf16.gmra.mxu0 %v5634_v37  ;;  %v5071_v30 = vld [vmem:[#allocation10 + $0x94] ss:$8 sps:$4 sm:$0xff]   ;;  %v5069_v58 = vld [vmem:[#allocation10 + $0x90] ss:$8 sps:$4 sm:$0xff]   ;;  %v5077_v47 = vld [vmem:[#allocation10 + $0x84] ss:$8 sps:$4 sm:$0xff]  }
 0x1b6   :  { %v1422_v54 = vmax.f32 %v1390_v31, 0.0  ;;  %v1391_v28 = vadd.f32 %v5507_v2, %v1347_v1  ;;  %2564 = vmatprep.mubr.bf16.mxu1 %v5542_v34  ;;  %v5002_v2 = vld [vmem:[#allocation10 + $0x54] ss:$8 sps:$4 sm:$0xff]   ;;  %v5000_v34 = vld [vmem:[#allocation10 + $0x50] ss:$8 sps:$4 sm:$0xff]  }
 0x1b7   :  { %3190 = vmatprep.subr.bf16.mxu0 %v5002_v2  ;;  %v5075_v31 = vld [vmem:[#allocation10 + $0x80] ss:$8 sps:$4 sm:$0xff]   ;;  %v5080_v1 = vld [vmem:[#allocation10 + $0x1b4] ss:$8 sps:$4 sm:$0xff]   ;;  %v5092_v2 = vld [vmem:[#allocation10 + $0x184] ss:$8 sps:$4 sm:$0xff]  }
 0x1b8   :  { %v1423_v61 = vmax.f32 %v1391_v28, 0.0  ;;  %v5648_v16 = vpack.c.bf16 %v1422_v54, %v1420_v59  ;;  %3191 = vmatpush1.bf16.msra.mxu0 %v5000_v34  ;;  %v5078_v59 = vld [vmem:[#allocation10 + $0x1b0] ss:$8 sps:$4 sm:$0xff]   ;;  %v5083_v54 = vld [vmem:[#allocation10 + $0x1a4] ss:$8 sps:$4 sm:$0xff]  }
 0x1b9   :  { %3192 = vmatprep.subr.bf16.mxu0 %v5005_v62  ;;  %v5081_v28 = vld [vmem:[#allocation10 + $0x1a0] ss:$8 sps:$4 sm:$0xff]   ;;  %v5095_v34 = vld [vmem:[#allocation10 + $0x264] ss:$8 sps:$4 sm:$0xff]  }
 0x1ba   :  { %v5650_v22 = vpack.c.bf16 %v1423_v61, %v1421_v49  ;;  %v5086_v49 = vld [vmem:[#allocation10 + $0x194] ss:$8 sps:$4 sm:$0xff]   ;;  %v5090_v62 = vld [vmem:[#allocation10 + $0x180] ss:$8 sps:$4 sm:$0xff]  }
 0x1bb   :  { %v5089_v61 = vld [vmem:[#allocation10 + $0x274] ss:$8 sps:$4 sm:$0xff]  }
 0x1bc   :  { %2232 = vmatprep.mubr.bf16.mxu0 %v5650_v22  ;;  %3193 = vmatpush1.bf16.msra.mxu0 %v5003_v5  ;;  %v5093_v5 = vld [vmem:[#allocation10 + $0x260] ss:$8 sps:$4 sm:$0xff]  }
 0x1bd   :  { %2233 = vmatmul.mubr.bf16.gmra.mxu0 %v5648_v16  ;;  %2565 = vmatmul.mubr.bf16.vlgmr.msra.gmra.mxu1 %v5537_v51  ;;  %v5011_v51 = vld [vmem:[#allocation10 + $0x34] ss:$8 sps:$4 sm:$0xff]  }
 0x1be   :  { %2574 = vmatprep.mubr.bf16.mxu1 %v5566_v48  ;;  %3218 = vmatprep.mubr.bf16.mxu0 %v6108_v10  ;;  %v5014_v48 = vld [vmem:[#allocation10 + $0x164] ss:$8 sps:$4 sm:$0xff]  }
 0x1bf   :  { %3460 = vmatpush1.bf16.msra.mxu1 %v5006_v14  ;;  %3194 = vmatprep.subr.bf16.mxu0 %v5011_v51  ;;  %v5096_v14 = vld [vmem:[#allocation10 + $0x250] ss:$8 sps:$4 sm:$0xff]   ;;  %v5101_v51 = vld [vmem:[#allocation10 + $0x244] ss:$8 sps:$4 sm:$0xff]  }
 0x1c0   :  { %3461 = vmatprep.subr.bf16.mxu1 %v5014_v48  ;;  %v5104_v48 = vld [vmem:[#allocation10 + $0x234] ss:$8 sps:$4 sm:$0xff]  }
 0x1c5   :  { %2575 = vmatmul.mubr.bf16.gmra.mxu1 %v5561_v46  ;;  %v5009_v46 = vld [vmem:[#allocation10 + $0x30] ss:$8 sps:$4 sm:$0xff]  }
 0x1c6   :  { %2584 = vmatprep.mubr.bf16.mxu1 %v5586_v43  ;;  %3195 = vmatpush1.bf16.msra.mxu0 %v5009_v46  ;;  %v5012_v43 = vld [vmem:[#allocation10 + $0x160] ss:$8 sps:$4 sm:$0xff]  }
 0x1c7   :  { %3462 = vmatpush1.bf16.msra.mxu1 %v5012_v43  ;;  %3196 = vmatprep.subr.bf16.mxu0 %v5017_v32  ;;  %v5099_v46 = vld [vmem:[#allocation10 + $0x240] ss:$8 sps:$4 sm:$0xff]   ;;  %v5102_v43 = vld [vmem:[#allocation10 + $0x230] ss:$8 sps:$4 sm:$0xff]   ;;  %v5107_v32 = vld [vmem:[#allocation10 + $0x224] ss:$8 sps:$4 sm:$0xff]  }
 0x1c8   :  { %3463 = vmatprep.subr.bf16.mxu1 %v5020_v36  ;;  %v5110_v36 = vld [vmem:[#allocation10 + $0x214] ss:$8 sps:$4 sm:$0xff]  }
 0x1ca   :  { %3197 = vmatpush1.bf16.msra.mxu0 %v5015_v40  ;;  %v5105_v40 = vld [vmem:[#allocation10 + $0x220] ss:$8 sps:$4 sm:$0xff]  }
 0x1cb   :  { %3464 = vmatpush1.bf16.msra.mxu1 %v5018_v4  ;;  %v5108_v4 = vld [vmem:[#allocation10 + $0x210] ss:$8 sps:$4 sm:$0xff]  }
 0x1cc   :  { %3465 = vmatprep.subr.bf16.mxu1 %v5026_v9  ;;  %v5116_v9 = vld [vmem:[#allocation10 + $0x2f4] ss:$8 sps:$4 sm:$0xff]  }
 0x1cd   :  { %2585 = vmatmul.mubr.bf16.gmra.mxu1 %v5581_v23  ;;  %v5023_v23 = vld [vmem:[#allocation10 + $0x14] ss:$8 sps:$4 sm:$0xff]  }
 0x1ce   :  { %2594 = vmatprep.mubr.bf16.mxu1 %v5606_v20  ;;  %v5021_v20 = vld [vmem:[#allocation10 + $0x10] ss:$8 sps:$4 sm:$0xff]   ;;  %3198 = vmatprep.subr.bf16.mxu0 %v5023_v23  ;;  %v5113_v23 = vld [vmem:[#allocation10 + $0x204] ss:$8 sps:$4 sm:$0xff]  }
 0x1cf   :  { %3199 = vmatpush1.bf16.msra.mxu0 %v5021_v20  ;;  %3466 = vmatpush1.bf16.msra.mxu1 %v5024_v0  ;;  %v5111_v20 = vld [vmem:[#allocation10 + $0x200] ss:$8 sps:$4 sm:$0xff]   ;;  %v5114_v0 = vld [vmem:[#allocation10 + $0x2f0] ss:$8 sps:$4 sm:$0xff]  }
 0x1d0   :  { %3200 = vmatprep.subr.bf16.mxu0 %v5029_v8  ;;  %3467 = vmatprep.subr.bf16.mxu1 %v5032_v52  ;;  %v5119_v8 = vld [vmem:[#allocation10 + $0x2e4] ss:$8 sps:$4 sm:$0xff]   ;;  %v5122_v52 = vld [vmem:[#allocation10 + $0x2d4] ss:$8 sps:$4 sm:$0xff]  }
 0x1d3   :  { %3201 = vmatpush1.bf16.msra.mxu0 %v5027_v39  ;;  %3468 = vmatpush1.bf16.msra.mxu1 %v5030_v24  ;;  %v5117_v39 = vld [vmem:[#allocation10 + $0x2e0] ss:$8 sps:$4 sm:$0xff]   ;;  %v5120_v24 = vld [vmem:[#allocation10 + $0x2d0] ss:$8 sps:$4 sm:$0xff]  }
 0x1d4   :  { %3469 = vmatprep.subr.bf16.mxu1 %v5038_v25  ;;  %v5128_v25 = vld [vmem:[#allocation10 + $0x2b4] ss:$8 sps:$4 sm:$0xff]  }
 0x1d5   :  { %2595 = vmatmul.mubr.bf16.gmra.mxu1 %v5601_v15  ;;  %v5035_v15 = vld [vmem:[#allocation10 + $0xf4] ss:$8 sps:$4 sm:$0xff]  }
 0x1d6   :  { %2604 = vmatprep.mubr.bf16.mxu1 %v5622_v27  ;;  %v5033_v27 = vld [vmem:[#allocation10 + $0xf0] ss:$8 sps:$4 sm:$0xff]   ;;  %3202 = vmatprep.subr.bf16.mxu0 %v5035_v15  ;;  %v5125_v15 = vld [vmem:[#allocation10 + $0x2c4] ss:$8 sps:$4 sm:$0xff]  }
 0x1d7   :  { %3203 = vmatpush2.bf16.msra.mxu0 %v5033_v27  ;;  %3470 = vmatpush1.bf16.msra.mxu1 %v5036_v57  ;;  %v5123_v27 = vld [vmem:[#allocation10 + $0x2c0] ss:$8 sps:$4 sm:$0xff]   ;;  %v5126_v57 = vld [vmem:[#allocation10 + $0x2b0] ss:$8 sps:$4 sm:$0xff]  }
 0x1d8   :  { %3204 = vmatprep.subr.bf16.mxu0 %v5041_v3  ;;  %3471 = vmatprep.subr.bf16.mxu1 %v5044_v12  ;;  %v5671_v3 = vpop.f32.mrf.mxu1  ;;  %v5129_v12 = vld [vmem:[#allocation10 + $0x2a0] ss:$8 sps:$4 sm:$0xff]  }
 0x1db   :  { %3205 = vmatpush2.bf16.msra.mxu0 %v5039_v53  ;;  %3472 = vmatpush1.bf16.msra.mxu1 %v5042_v6  ;;  %v5131_v53 = vld [vmem:[#allocation10 + $0x2a4] ss:$8 sps:$4 sm:$0xff]   ;;  %v1893_v6 = vpop.f32.mrf.mxu1 }
 0x1dc   :  { %3473 = vmatprep.subr.bf16.mxu1 %v5050_v60 }
 0x1dd   :  { %2605 = vmatmul.mubr.bf16.gmra.mxu1 %v5618_v41  ;;  %v5047_v41 = vld [vmem:[#allocation10 + $0xd4] ss:$8 sps:$4 sm:$0xff]   ;;  %v1895_v60 = vpop.f32.mrf.mxu1 }
 0x1de   :  { %2614 = vmatprep.mubr.bf16.mxu1 %v5638_v33  ;;  %3206 = vmatprep.subr.bf16.mxu0 %v5047_v41  ;;  %v5074_v33 = vld [vmem:[#allocation10 + $0x1c4] ss:$8 sps:$4 sm:$0xff]   ;;  %v5134_v41 = vld [vmem:[#allocation10 + $0x294] ss:$8 sps:$4 sm:$0xff]  }
 0x1df   :  { %3207 = vmatpush2.bf16.msra.mxu0 %v5045_v44  ;;  %3474 = vmatpush1.bf16.msra.mxu1 %v5048_v7  ;;  %v5132_v44 = vld [vmem:[#allocation10 + $0x290] ss:$8 sps:$4 sm:$0xff]   ;;  %v5137_v7 = vld [vmem:[#allocation10 + $0x284] ss:$8 sps:$4 sm:$0xff]  }
 0x1e0   :  { %3208 = vmatprep.subr.bf16.mxu0 %v5053_v26  ;;  %3475 = vmatprep.subr.bf16.mxu1 %v5056_v21  ;;  %v5135_v26 = vld [vmem:[#allocation10 + $0x280] ss:$8 sps:$4 sm:$0xff]  }
 0x1e3   :  { %3209 = vmatpush2.bf16.msra.mxu0 %v5051_v55  ;;  %3476 = vmatpush2.bf16.msra.mxu1 %v5054_v56  ;;  %v1897_v55 = vpop.f32.mrf.mxu1 }
 0x1e4   :  { %3210 = vmatprep.subr.bf16.mxu0 %v5059_v35  ;;  %3477 = vmatprep.subr.bf16.mxu1 %v5062_v18 }
 0x1e5   :  { %2615 = vmatmul.mubr.bf16.gmra.mxu1 %v5634_v37  ;;  %v5063_v37 = vld [vmem:[#allocation10 + $0xa0] ss:$8 sps:$4 sm:$0xff]  }
 0x1e6   :  { %2624 = vmatprep.mubr.bf16.mxu1 %v5650_v22  ;;  %v5087_v22 = vld [vmem:[#allocation10 + $0x270] ss:$8 sps:$4 sm:$0xff]  }
 0x1e7   :  { %3211 = vmatpush2.bf16.msra.mxu0 %v5057_v42  ;;  %3478 = vmatpush2.bf16.msra.mxu1 %v5060_v19 }
 0x1e8   :  { %3212 = vmatprep.subr.bf16.mxu0 %v5065_v29  ;;  %3479 = vmatprep.subr.bf16.mxu1 %v5068_v11 }
 0x1eb   :  { %3213 = vmatpush2.bf16.msra.mxu0 %v5063_v37  ;;  %3480 = vmatpush2.bf16.msra.mxu1 %v5066_v45 }
 0x1ec   :  { %3214 = vmatprep.subr.bf16.mxu0 %v5071_v30  ;;  %3481 = vmatprep.subr.bf16.mxu1 %v5074_v33 }
 0x1ed   :  { %2625 = vmatmul.mubr.bf16.gmra.mxu1 %v5648_v16  ;;  %v5084_v16 = vld [vmem:[#allocation10 + $0x190] ss:$8 sps:$4 sm:$0xff]  }
 0x1ee   :  { %2634 = vmatprep.mubr.bf16.mxu1 %v6108_v10 }
 0x1ef   :  { %3215 = vmatpush2.bf16.msra.mxu0 %v5069_v58  ;;  %3482 = vmatpush2.bf16.msra.mxu1 %v5072_v38 }
 0x1f0   :  { %3216 = vmatprep.subr.bf16.mxu0 %v5077_v47  ;;  %3483 = vmatprep.subr.bf16.mxu1 %v5080_v1 }
 0x1f3   :  { %3217 = vmatpush2.bf16.msra.mxu0 %v5075_v31  ;;  %3484 = vmatpush2.bf16.msra.mxu1 %v5078_v59 }
 0x1f4   :  { %3485 = vmatprep.subr.bf16.mxu1 %v5083_v54  ;;  %3861 = vmatprep.subr.bf16.mxu0 %v5089_v61 }
 0x1f5   :  { %2635 = vmatmul.mubr.bf16.gmra.mxu1 %v6109_v63 }
 0x1f6   :  { %3219 = vmatmul.mubr.bf16.vlgmr.msra.gmra.mxu0 %v6109_v63 }
 0x1f7   :  { %3486 = vmatpush2.bf16.msra.mxu1 %v5081_v28  ;;  %3862 = vmatpush1.bf16.msra.mxu0 %v5087_v22 }
 0x1f8   :  { %3487 = vmatprep.subr.bf16.mxu1 %v5086_v49  ;;  %3863 = vmatprep.subr.bf16.mxu0 %v5095_v34 }
 0x1fb   :  { %3488 = vmatpush2.bf16.msra.mxu1 %v5084_v16  ;;  %3864 = vmatpush1.bf16.msra.mxu0 %v5093_v5 }
 0x1fc   :  { %3489 = vmatprep.subr.bf16.mxu1 %v5092_v2  ;;  %3865 = vmatprep.subr.bf16.mxu0 %v5098_v50 }
 0x1ff   :  { %3490 = vmatpush2.bf16.msra.mxu1 %v5090_v62  ;;  %3866 = vmatpush1.bf16.msra.mxu0 %v5096_v14 }
 0x200   :  { %3867 = vmatprep.subr.bf16.mxu0 %v5101_v51 }
 0x203   :  { %3868 = vmatpush1.bf16.msra.mxu0 %v5099_v46 }
 0x204   :  { %3869 = vmatprep.subr.bf16.mxu0 %v5104_v48 }
 0x207   :  { %3870 = vmatpush1.bf16.msra.mxu0 %v5102_v43 }
 0x208   :  { %3871 = vmatprep.subr.bf16.mxu0 %v5107_v32 }
 0x20b   :  { %3872 = vmatpush1.bf16.msra.mxu0 %v5105_v40 }
 0x20c   :  { %3873 = vmatprep.subr.bf16.mxu0 %v5110_v36 }
 0x20f   :  { %3874 = vmatpush1.bf16.msra.mxu0 %v5108_v4 }
 0x210   :  { %3875 = vmatprep.subr.bf16.mxu0 %v5113_v23 }
 0x213   :  { %3876 = vmatpush1.bf16.msra.mxu0 %v5111_v20 }
 0x214   :  { %3877 = vmatprep.subr.bf16.mxu0 %v5116_v9 }
 0x217   :  { %3878 = vmatpush2.bf16.msra.mxu0 %v5114_v0 }
 0x218   :  { %3879 = vmatprep.subr.bf16.mxu0 %v5119_v8 }
 0x21b   :  { %3880 = vmatpush2.bf16.msra.mxu0 %v5117_v39 }
 0x21c   :  { %3881 = vmatprep.subr.bf16.mxu0 %v5122_v52 }
 0x21f   :  { %3882 = vmatpush2.bf16.msra.mxu0 %v5120_v24 }
 0x220   :  { %3883 = vmatprep.subr.bf16.mxu0 %v5125_v15 }
 0x223   :  { %3884 = vmatpush2.bf16.msra.mxu0 %v5123_v27  ;;  %v2677_v27 = vld [vmem:[%s6090_s4] sm:$0x3] }
 0x224   :  { %3885 = vmatprep.subr.bf16.mxu0 %v5128_v25 }
 0x227   :  { %3886 = vmatpush2.bf16.msra.mxu0 %v5126_v57 }
 0x228   :  { %3887 = vmatprep.subr.bf16.mxu0 %v5131_v53 }
 0x22b   :  { %3888 = vmatpush2.bf16.msra.mxu0 %v5129_v12 }
 0x22c   :  { %3889 = vmatprep.subr.bf16.mxu0 %v5134_v41 }
 0x22f   :  { %3890 = vmatpush2.bf16.msra.mxu0 %v5132_v44  ;;  %v5754_v44 = vrot.slane %v2677_v27, %v5499_v17 }
 0x230   :  { %3891 = vmatprep.subr.bf16.mxu0 %v5137_v7 }
 0x233   :  { %3892 = vmatpush2.bf16.msra.mxu0 %v5135_v26  ;;  %v5757_v26 = vrot.slane %v2677_v27, %v5490_v13 }
 0x245   :  { %v1901_v21 = vpop.f32.mrf.mxu1  ;;  %v2164_v56 = vpop.f32.mrf.mxu0 }
 0x246   :  { %v2165_v25 = vadd.f32 %v2164_v56, %v5671_v3 }
 0x247   :  { %v5673_v35 = vpop.f32.mrf.mxu1  ;;  %v2166_v42 = vpop.f32.mrf.mxu0 }
 0x248   :  { %v2167_v15 = vadd.f32 %v2166_v42, %v1893_v6 }
 0x249   :  { %v5675_v18 = vpop.f32.mrf.mxu1  ;;  %v2168_v19 = vpop.f32.mrf.mxu0 }
 0x24a   :  { %v2169_v12 = vadd.f32 %v2168_v19, %v1895_v60 }
 0x24b   :  { %v5677_v29 = vpop.f32.mrf.mxu1  ;;  %v2170_v37 = vpop.f32.mrf.mxu0 }
 0x24c   :  { %v2171_v6 = vadd.f32 %v2170_v37, %v1897_v55 }
 0x24d   :  { %v5679_v11 = vpop.f32.mrf.mxu1  ;;  %v2174_v45 = vpop.f32.mrf.mxu0 }
 0x24f   :  { %v5681_v30 = vpop.f32.mrf.mxu1  ;;  %v2176_v58 = vpop.f32.mrf.mxu0 }
 0x251   :  { %v5683_v33 = vpop.f32.mrf.mxu1  ;;  %v2178_v38 = vpop.f32.mrf.mxu0 }
 0x252   :  { %v2179_v37 = vadd.f32 %v2178_v38, %v5675_v18 }
 0x253   :  { %v5685_v47 = vpop.f32.mrf.mxu1  ;;  %v5689_v1 = vpop.f32.mrf.mxu0 }
 0x255   :  { %v5687_v31 = vpop.f32.mrf.mxu1  ;;  %v5695_v28 = vpop.f32.mrf.mxu0 }
 0x257   :  { %v5691_v59 = vpop.f32.mrf.mxu1  ;;  %v5701_v16 = vpop.f32.mrf.mxu0 }
 0x259   :  { %v5693_v54 = vpop.f32.mrf.mxu1  ;;  %v5707_v34 = vpop.f32.mrf.mxu0 }
 0x25b   :  { %v5697_v49 = vpop.f32.mrf.mxu1  ;;  %v5713_v50 = vpop.f32.mrf.mxu0 }
 0x25d   :  { %v5699_v61 = vpop.f32.mrf.mxu1  ;;  %v5719_v46 = vpop.f32.mrf.mxu0 }
 0x25f   :  { %v5703_v22 = vpop.f32.mrf.mxu1  ;;  %v5725_v32 = vpop.f32.mrf.mxu0 }
 0x261   :  { %v5705_v2 = vpop.f32.mrf.mxu1  ;;  %v5731_v4 = vpop.f32.mrf.mxu0 }
 0x263   :  { %v5709_v62 = vpop.f32.mrf.mxu1  ;;  %v5737_v9 = vpop.f32.mrf.mxu0 }
 0x265   :  { %v5711_v5 = vpop.f32.mrf.mxu1  ;;  %v5743_v39 = vpop.f32.mrf.mxu0 }
 0x267   :  { %v5715_v14 = vpop.f32.mrf.mxu1  ;;  %v5751_v57 = vpop.f32.mrf.mxu0 }
 0x269   :  { %v5717_v51 = vpop.f32.mrf.mxu1  ;;  %v5759_v10 = vpop.f32.mrf.mxu0 }
 0x26b   :  { %v5721_v48 = vpop.f32.mrf.mxu1 }
 0x26d   :  { %v5723_v43 = vpop.f32.mrf.mxu1 }
 0x26f   :  { %v5727_v40 = vpop.f32.mrf.mxu1 }
 0x271   :  { %v5729_v36 = vpop.f32.mrf.mxu1 }
 0x273   :  { %v5733_v23 = vpop.f32.mrf.mxu1 }
 0x275   :  { %v5735_v20 = vpop.f32.mrf.mxu1 }
 0x277   :  { %v5739_v0 = vpop.f32.mrf.mxu1 }
 0x279   :  { %v5741_v8 = vpop.f32.mrf.mxu1 }
 0x27a   :  { %6110 = vst [vmem:[#allocation19_spill] sm:$0xff] %v5741_v8  ;;  %v2175_v8 = vadd.f32 %v2174_v45, %v1901_v21 }
 0x27b   :  { %v5745_v52 = vpop.f32.mrf.mxu1 }
 0x27c   :  { %6111 = vst [vmem:[#allocation20_spill] sm:$0xff] %v5745_v52 }
 0x27d   :  { %v2566_v24 = vpop.f32.mrf.mxu1 }
 0x27e   :  { %v2645_v7 = vadd.f32 %v2566_v24, %v2165_v25  ;;  %v2177_v24 = vadd.f32 %v2176_v58, %v5673_v35 }
 0x27f   :  { %v2568_v53 = vpop.f32.mrf.mxu1 }
 0x280   :  { %v2646_v41 = vadd.f32 %v2568_v53, %v2167_v15  ;;  %v2689_v19 = vadd.f32 %v5757_v26, %v2645_v7  ;;  %v5766_v53 = vpop.f32.mrf.mxu0 }
 0x281   :  { %v2570_v63 = vpop.f32.mrf.mxu1 }
 0x282   :  { %v2647_v42 = vadd.f32 %v2570_v63, %v2169_v12  ;;  %v2690_v3 = vadd.f32 %v5754_v44, %v2646_v41  ;;  %v2721_v41 = vmax.f32 %v2689_v19, 0.0 }
 0x283   :  { %v2572_v52 = vpop.f32.mrf.mxu1 }
 0x284   :  { %v2691_v56 = vadd.f32 %v5757_v26, %v2647_v42  ;;  %v2648_v60 = vadd.f32 %v2572_v52, %v2171_v6  ;;  %v2722_v21 = vmax.f32 %v2690_v3, 0.0  ;;  %v2181_v52 = vadd.f32 %v5689_v1, %v5677_v29  ;;  %v5774_v6 = vpop.f32.mrf.mxu0 }
 0x285   :  { %v2576_v15 = vpop.f32.mrf.mxu1  ;;  %v2187_v29 = vadd.f32 %v5701_v16, %v5681_v30  ;;  %v2191_v16 = vadd.f32 %v5713_v50, %v5685_v47  ;;  %v2197_v47 = vadd.f32 %v5725_v32, %v5691_v59 }
 0x286   :  { %v2692_v27 = vadd.f32 %v5754_v44, %v2648_v60  ;;  %v2649_v25 = vadd.f32 %v2576_v15, %v2175_v8  ;;  %v2723_v63 = vmax.f32 %v2691_v56, 0.0  ;;  %v2185_v8 = vadd.f32 %v5695_v28, %v5679_v11 }
 0x287   :  { %v2578_v55 = vpop.f32.mrf.mxu1 }
 0x288   :  { %v2724_v45 = vmax.f32 %v2692_v27, 0.0  ;;  %v2650_v12 = vadd.f32 %v2578_v55, %v2177_v24  ;;  %v2693_v7 = vadd.f32 %v5757_v26, %v2649_v25  ;;  %v2753_v60 = vpack.c.bf16 %v2723_v63, %v2721_v41  ;;  %v5783_v27 = vpop.f32.mrf.mxu0 }
 0x289   :  { %v2580_v42 = vpop.f32.mrf.mxu1  ;;  %v2189_v24 = vadd.f32 %v5707_v34, %v5683_v33  ;;  %v2195_v33 = vadd.f32 %v5719_v46, %v5687_v31 }
 0x28a   :  { %v2651_v35 = vadd.f32 %v2580_v42, %v2179_v37  ;;  %v2754_v58 = vpack.c.bf16 %v2724_v45, %v2722_v21  ;;  %v2694_v18 = vadd.f32 %v5754_v44, %v2650_v12  ;;  %v2725_v19 = vmax.f32 %v2693_v7, 0.0  ;;  %v5794_v34 = vpop.f32.mrf.mxu0 }
 0x28b   :  { %v2582_v56 = vpop.f32.mrf.mxu1 }
 0x28c   :  { %v2695_v38 = vadd.f32 %v5757_v26, %v2651_v35  ;;  %v2652_v3 = vadd.f32 %v2582_v56, %v2181_v52  ;;  %3228 = vmatprep.mubr.bf16.mxu0 %v2754_v58  ;;  %3491 = vmatprep.mubr.bf16.mxu1 %v2754_v58  ;;  %v2726_v63 = vmax.f32 %v2694_v18, 0.0  ;;  %v2199_v56 = vadd.f32 %v5731_v4, %v5693_v54 }
 0x28d   :  { %v2586_v1 = vpop.f32.mrf.mxu1  ;;  %3229 = vmatmul.mubr.bf16.gmra.mxu0 %v2753_v60  ;;  %3492 = vmatmul.mubr.bf16.vlgmr.msra.gmra.mxu1 %v2753_v60  ;;  %v5807_v60 = vpop.f32.mrf.mxu0  ;;  %v2205_v54 = vadd.f32 %v5743_v39, %v5699_v61 }
 0x28e   :  { %v2727_v15 = vmax.f32 %v2695_v38, 0.0  ;;  %v2696_v11 = vadd.f32 %v5754_v44, %v2652_v3  ;;  %v2653_v28 = vadd.f32 %v2586_v1, %v2185_v8  ;;  %v2201_v1 = vadd.f32 %v5737_v9, %v5697_v49 }
 0x28f   :  { %v2588_v25 = vpop.f32.mrf.mxu1  ;;  %v2224_v4 = vpop.f32.mrf.mxu0  ;;  %v2207_v49 = vadd.f32 %v5751_v57, %v5703_v22 }
 0x290   :  { %v2728_v55 = vmax.f32 %v2696_v11, 0.0  ;;  %v2654_v37 = vadd.f32 %v2588_v25, %v2187_v29  ;;  %v5785_v21 = vpack.c.bf16 %v2727_v15, %v2725_v19  ;;  %v2697_v45 = vadd.f32 %v5757_v26, %v2653_v28 }
 0x291   :  { %v2590_v30 = vpop.f32.mrf.mxu1 }
 0x292   :  { %v2655_v12 = vadd.f32 %v2590_v30, %v2189_v24  ;;  %v5790_v41 = vpack.c.bf16 %v2728_v55, %v2726_v63  ;;  %v2698_v52 = vadd.f32 %v5754_v44, %v2654_v37  ;;  %v2729_v31 = vmax.f32 %v2697_v45, 0.0 }
 0x293   :  { %v2592_v42 = vpop.f32.mrf.mxu1  ;;  %v2209_v30 = vadd.f32 %v5759_v10, %v5705_v2 }
 0x294   :  { %v2699_v7 = vadd.f32 %v5757_v26, %v2655_v12  ;;  %v2656_v35 = vadd.f32 %v2592_v42, %v2191_v16  ;;  %3238 = vmatprep.mubr.bf16.mxu0 %v5790_v41  ;;  %3501 = vmatprep.mubr.bf16.mxu1 %v5790_v41  ;;  %v2730_v38 = vmax.f32 %v2698_v52, 0.0  ;;  %v2226_v16 = vpop.f32.mrf.mxu0  ;;  %v2211_v52 = vadd.f32 %v5766_v53, %v5709_v62 }
 0x295   :  { %v2596_v50 = vpop.f32.mrf.mxu1  ;;  %3239 = vmatmul.mubr.bf16.gmra.mxu0 %v5785_v21  ;;  %3502 = vmatmul.mubr.bf16.gmra.mxu1 %v5785_v21  ;;  %v2217_v62 = vadd.f32 %v5783_v27, %v5715_v14 }
 0x296   :  { %v2731_v46 = vmax.f32 %v2699_v7, 0.0  ;;  %v2700_v58 = vadd.f32 %v5754_v44, %v2656_v35  ;;  %v2657_v8 = vadd.f32 %v2596_v50, %v2195_v33  ;;  %v2215_v50 = vadd.f32 %v5774_v6, %v5711_v5  ;;  %v2228_v10 = vpop.f32.mrf.mxu0 }
 0x297   :  { %v2598_v18 = vpop.f32.mrf.mxu1 }
 0x298   :  { %v2732_v3 = vmax.f32 %v2700_v58, 0.0  ;;  %v2658_v29 = vadd.f32 %v2598_v18, %v2197_v47  ;;  %v5809_v59 = vpack.c.bf16 %v2731_v46, %v2729_v31  ;;  %v2701_v19 = vadd.f32 %v5757_v26, %v2657_v8 }
 0x299   :  { %v2600_v32 = vpop.f32.mrf.mxu1  ;;  %v2219_v18 = vadd.f32 %v5794_v34, %v5717_v51 }
 0x29a   :  { %v2659_v15 = vadd.f32 %v2600_v32, %v2199_v56  ;;  %v5814_v11 = vpack.c.bf16 %v2732_v3, %v2730_v38  ;;  %v2702_v24 = vadd.f32 %v5754_v44, %v2658_v29  ;;  %v2733_v61 = vmax.f32 %v2701_v19, 0.0  ;;  %v2230_v38 = vpop.f32.mrf.mxu0 }
 0x29b   :  { %v2602_v28 = vpop.f32.mrf.mxu1  ;;  %v2221_v19 = vadd.f32 %v5807_v60, %v5721_v48  ;;  %v2227_v48 = vadd.f32 %v2226_v16, %v5727_v40  ;;  %v2231_v40 = vadd.f32 %v2230_v38, %v5733_v23 }
 0x29c   :  { %v2703_v25 = vadd.f32 %v5757_v26, %v2659_v15  ;;  %v2660_v63 = vadd.f32 %v2602_v28, %v2201_v1  ;;  %3248 = vmatprep.mubr.bf16.mxu0 %v5814_v11  ;;  %3511 = vmatprep.mubr.bf16.mxu1 %v5814_v11  ;;  %v2734_v12 = vmax.f32 %v2702_v24, 0.0  ;;  %v2225_v24 = vadd.f32 %v2224_v4, %v5723_v43 }
 0x29d   :  { %v2606_v9 = vpop.f32.mrf.mxu1  ;;  %3249 = vmatmul.mubr.bf16.gmra.mxu0 %v5809_v59  ;;  %3512 = vmatmul.mubr.bf16.gmra.mxu1 %v5809_v59 }
 0x29e   :  { %v2735_v39 = vmax.f32 %v2703_v25, 0.0  ;;  %v2704_v55 = vadd.f32 %v5754_v44, %v2660_v63  ;;  %v2661_v37 = vadd.f32 %v2606_v9, %v2205_v54  ;;  %v2234_v25 = vpop.f32.mrf.mxu0 }
 0x29f   :  { %v2608_v45 = vpop.f32.mrf.mxu1 }
 0x2a0   :  { %v5829_v33 = vpack.c.bf16 %v2735_v39, %v2733_v61  ;;  %v2736_v42 = vmax.f32 %v2704_v55, 0.0  ;;  %v2662_v22 = vadd.f32 %v2608_v45, %v2207_v49  ;;  %v2705_v7 = vadd.f32 %v5757_v26, %v2661_v37  ;;  %v2236_v55 = vpop.f32.mrf.mxu0 }
 0x2a1   :  { %v2610_v57 = vpop.f32.mrf.mxu1  ;;  %v2229_v39 = vadd.f32 %v2228_v10, %v5729_v36 }
 0x2a2   :  { %v2663_v35 = vadd.f32 %v2610_v57, %v2209_v30  ;;  %v5834_v47 = vpack.c.bf16 %v2736_v42, %v2734_v12  ;;  %v2706_v31 = vadd.f32 %v5754_v44, %v2662_v22  ;;  %v2737_v5 = vmax.f32 %v2705_v7, 0.0 }
 0x2a3   :  { %v2612_v2 = vpop.f32.mrf.mxu1  ;;  %v2235_v7 = vadd.f32 %v2234_v25, %v5735_v20  ;;  %v6112_v20 = vld [vmem:[#allocation19_spill] sm:$0xff] }
 0x2a4   :  { %v2707_v46 = vadd.f32 %v5757_v26, %v2663_v35  ;;  %v2664_v58 = vadd.f32 %v2612_v2, %v2211_v52  ;;  %3258 = vmatprep.mubr.bf16.mxu0 %v5834_v47  ;;  %3521 = vmatprep.mubr.bf16.mxu1 %v5834_v47  ;;  %v2738_v29 = vmax.f32 %v2706_v31, 0.0  ;;  %v2238_v35 = vpop.f32.mrf.mxu0  ;;  %v2237_v31 = vadd.f32 %v2236_v55, %v5739_v0 }
 0x2a5   :  { %v2616_v53 = vpop.f32.mrf.mxu1  ;;  %3259 = vmatmul.mubr.bf16.gmra.mxu0 %v5829_v33  ;;  %3522 = vmatmul.mubr.bf16.gmra.mxu1 %v5829_v33 }
 0x2a6   :  { %v2739_v6 = vmax.f32 %v2707_v46, 0.0  ;;  %v2708_v8 = vadd.f32 %v5754_v44, %v2664_v58  ;;  %v2665_v56 = vadd.f32 %v2616_v53, %v2215_v50 }
 0x2a7   :  { %v2618_v3 = vpop.f32.mrf.mxu1 }
 0x2a8   :  { %v5849_v32 = vpack.c.bf16 %v2739_v6, %v2737_v5  ;;  %v2740_v1 = vmax.f32 %v2708_v8, 0.0  ;;  %v2666_v14 = vadd.f32 %v2618_v3, %v2217_v62  ;;  %v2709_v15 = vadd.f32 %v5757_v26, %v2665_v56  ;;  %v2240_v6 = vpop.f32.mrf.mxu0 }
 0x2a9   :  { %v2620_v27 = vpop.f32.mrf.mxu1  ;;  %v2239_v5 = vadd.f32 %v2238_v35, %v6112_v20 }
 0x2aa   :  { %v2667_v54 = vadd.f32 %v2620_v27, %v2219_v18  ;;  %v5854_v28 = vpack.c.bf16 %v2740_v1, %v2738_v29  ;;  %v2710_v34 = vadd.f32 %v5754_v44, %v2666_v14  ;;  %v2741_v9 = vmax.f32 %v2709_v15, 0.0  ;;  %v6113_v1 = vld [vmem:[#allocation20_spill] sm:$0xff] }
 0x2ab   :  { %v2622_v51 = vpop.f32.mrf.mxu1  ;;  %v2241_v14 = vadd.f32 %v2240_v6, %v6113_v1 }
 0x2ac   :  { %v2711_v63 = vadd.f32 %v5757_v26, %v2667_v54  ;;  %v2668_v49 = vadd.f32 %v2622_v51, %v2221_v19  ;;  %3268 = vmatprep.mubr.bf16.mxu0 %v5854_v28  ;;  %3531 = vmatprep.mubr.bf16.mxu1 %v5854_v28  ;;  %v2742_v30 = vmax.f32 %v2710_v34, 0.0 }
 0x2ad   :  { %v2626_v60 = vpop.f32.mrf.mxu1  ;;  %3269 = vmatmul.mubr.bf16.gmra.mxu0 %v5849_v32  ;;  %3532 = vmatmul.mubr.bf16.gmra.mxu1 %v5849_v32 }
 0x2ae   :  { %v2743_v43 = vmax.f32 %v2711_v63, 0.0  ;;  %v2712_v4 = vadd.f32 %v5754_v44, %v2668_v49  ;;  %v2669_v61 = vadd.f32 %v2626_v60, %v2225_v24 }
 0x2af   :  { %v2628_v37 = vpop.f32.mrf.mxu1 }
 0x2b0   :  { %v2763_v45 = vpack.c.bf16 %v2743_v43, %v2741_v9  ;;  %v2744_v12 = vmax.f32 %v2712_v4, 0.0  ;;  %v2670_v42 = vadd.f32 %v2628_v37, %v2227_v48  ;;  %v2713_v16 = vadd.f32 %v5757_v26, %v2669_v61 }
 0x2b1   :  { %v2630_v22 = vpop.f32.mrf.mxu1 }
 0x2b2   :  { %v2671_v57 = vadd.f32 %v2630_v22, %v2229_v39  ;;  %v2764_v52 = vpack.c.bf16 %v2744_v12, %v2742_v30  ;;  %v2714_v2 = vadd.f32 %v5754_v44, %v2670_v42  ;;  %v2745_v23 = vmax.f32 %v2713_v16, 0.0 }
 0x2b3   :  { %v2632_v50 = vpop.f32.mrf.mxu1 }
 0x2b4   :  { %v2715_v36 = vadd.f32 %v5757_v26, %v2671_v57  ;;  %v2672_v10 = vadd.f32 %v2632_v50, %v2231_v40  ;;  %3278 = vmatprep.mubr.bf16.mxu0 %v2764_v52  ;;  %3541 = vmatprep.mubr.bf16.mxu1 %v2764_v52  ;;  %v2746_v56 = vmax.f32 %v2714_v2, 0.0 }
 0x2b5   :  { %v2636_v46 = vpop.f32.mrf.mxu1  ;;  %3279 = vmatmul.mubr.bf16.gmra.mxu0 %v2763_v45  ;;  %3542 = vmatmul.mubr.bf16.gmra.mxu1 %v2763_v45 }
 0x2b6   :  { %v2747_v58 = vmax.f32 %v2715_v36, 0.0  ;;  %v2716_v62 = vadd.f32 %v5754_v44, %v2672_v10  ;;  %v2673_v53 = vadd.f32 %v2636_v46, %v2235_v7 }
 0x2b7   :  { %v2638_v8 = vpop.f32.mrf.mxu1 }
 0x2b8   :  { %v2765_v18 = vpack.c.bf16 %v2747_v58, %v2745_v23  ;;  %v2748_v38 = vmax.f32 %v2716_v62, 0.0  ;;  %v2674_v3 = vadd.f32 %v2638_v8, %v2237_v31  ;;  %v2717_v0 = vadd.f32 %v5757_v26, %v2673_v53 }
 0x2b9   :  { %v2640_v29 = vpop.f32.mrf.mxu1 }
 0x2ba   :  { %v2675_v27 = vadd.f32 %v2640_v29, %v2239_v5  ;;  %v2766_v19 = vpack.c.bf16 %v2748_v38, %v2746_v56  ;;  %v2718_v54 = vadd.f32 %v5754_v44, %v2674_v3  ;;  %v2749_v51 = vmax.f32 %v2717_v0, 0.0 }
 0x2bb   :  { %v2642_v15 = vpop.f32.mrf.mxu1 }
 0x2bc   :  { %v2719_v24 = vadd.f32 %v5757_v26, %v2675_v27  ;;  %v2676_v25 = vadd.f32 %v2642_v15, %v2241_v14  ;;  %3288 = vmatprep.mubr.bf16.mxu0 %v2766_v19  ;;  %3551 = vmatprep.mubr.bf16.mxu1 %v2766_v19  ;;  %v2750_v49 = vmax.f32 %v2718_v54, 0.0  ;;  %v6115_v26 = vld [vmem:[#allocation18_spill] sm:$0xff] }
 0x2bd   :  { %3289 = vmatmul.mubr.bf16.gmra.mxu0 %v2765_v18  ;;  %3552 = vmatmul.mubr.bf16.gmra.mxu1 %v2765_v18 }
 0x2be   :  { %v2751_v34 = vmax.f32 %v2719_v24, 0.0  ;;  %v2720_v63 = vadd.f32 %v5754_v44, %v2676_v25  ;;  %3893 = vmatprep.mubr.bf16.mxu0 %v5790_v41  ;;  %v6114_v44 = vld [vmem:[#allocation17_spill] sm:$0xff] }
 0x2c0   :  { %v2767_v48 = vpack.c.bf16 %v2751_v34, %v2749_v51  ;;  %v2752_v60 = vmax.f32 %v2720_v63, 0.0 }
 0x2c2   :  { %v2768_v9 = vpack.c.bf16 %v2752_v60, %v2750_v49 }
 0x2c4   :  { %3561 = vmatprep.mubr.bf16.mxu1 %v2768_v9 }
 0x2c5   :  { %3562 = vmatmul.mubr.bf16.gmra.mxu1 %v2767_v48  ;;  %3894 = vmatmul.mubr.bf16.vlgmr.msra.gmra.mxu0 %v5785_v21  ;;  %v3220_v21 = vpop.f32.mrf.mxu0 }
 0x2c6   :  { %3903 = vmatprep.mubr.bf16.mxu0 %v5814_v11 }
 0x2c7   :  { %v5889_v41 = vpop.f32.mrf.mxu0 }
 0x2cd   :  { %3904 = vmatmul.mubr.bf16.gmra.mxu0 %v5809_v59  ;;  %v5891_v59 = vpop.f32.mrf.mxu0 }
 0x2ce   :  { %3913 = vmatprep.mubr.bf16.mxu0 %v5834_v47 }
 0x2cf   :  { %v3226_v11 = vpop.f32.mrf.mxu0 }
 0x2d5   :  { %3914 = vmatmul.mubr.bf16.gmra.mxu0 %v5829_v33 }
 0x2d6   :  { %3923 = vmatprep.mubr.bf16.mxu0 %v5854_v28 }
 0x2dd   :  { %3924 = vmatmul.mubr.bf16.gmra.mxu0 %v5849_v32 }
 0x2de   :  { %3933 = vmatprep.mubr.bf16.mxu0 %v2764_v52 }
 0x2e5   :  { %3934 = vmatmul.mubr.bf16.gmra.mxu0 %v2763_v45 }
 0x2e6   :  { %3943 = vmatprep.mubr.bf16.mxu0 %v2766_v19 }
 0x2ed   :  { %3944 = vmatmul.mubr.bf16.gmra.mxu0 %v2765_v18 }
 0x2ee   :  { %3953 = vmatprep.mubr.bf16.mxu0 %v2768_v9 }
 0x2f5   :  { %3954 = vmatmul.mubr.bf16.gmra.mxu0 %v2767_v48 }
 0x2f6   :  { %3963 = vmatprep.mubr.bf16.mxu0 %v6114_v44  ;;  %v4006_v44 = vld [vmem:[%s6092_s6] sm:$0x3]  ;;  %s5255_s6 = smov [#allocation12]  }
 0x2fd   :  { %3964 = vmatmul.mubr.bf16.gmra.mxu0 %v6115_v26 }
 0x34d   :  { %v3230_v33 = vpop.f32.mrf.mxu0  ;;  %v3493_v47 = vpop.f32.mrf.mxu1 }
 0x34e   :  { %v3494_v26 = vadd.f32 %v3493_v47, %v3220_v21 }
 0x34f   :  { %v3232_v28 = vpop.f32.mrf.mxu0  ;;  %v3495_v32 = vpop.f32.mrf.mxu1 }
 0x351   :  { %v3234_v43 = vpop.f32.mrf.mxu0  ;;  %v3497_v4 = vpop.f32.mrf.mxu1 }
 0x352   :  { %v3498_v21 = vadd.f32 %v3497_v4, %v5891_v59 }
 0x353   :  { %v3236_v61 = vpop.f32.mrf.mxu0  ;;  %v3499_v39 = vpop.f32.mrf.mxu1 }
 0x354   :  { %v5893_v55 = vadd.f32 %v3499_v39, %v3226_v11 }
 0x355   :  { %v3240_v37 = vpop.f32.mrf.mxu0  ;;  %v3503_v30 = vpop.f32.mrf.mxu1 }
 0x356   :  { %v5895_v45 = vadd.f32 %v3503_v30, %v3230_v33  ;;  %v5963_v33 = vld [vmem:[%s6093_s7] sm:$0xff]  ;;  %s4163_s7 = sshll.u32 %s5255_s6, 4  ;;  %s4164_s7 = int_to_ptr.vmem [resolvable:$true] %s4163_s7 }
 0x357   :  { %v3242_v12 = vpop.f32.mrf.mxu0  ;;  %v3505_v42 = vpop.f32.mrf.mxu1  ;;  %v4608_v39 = vcombine.high %v5963_v33, %v5963_v33  ;;  %s5220_s13 = scalar_lea.vmem %s4164_s7, 128  ;;  %p5225_p7 = scmp.lt.s32.totalorder %s4164_s7, %s4164_s7 }
 0x358   :  { %v5897_v22 = vadd.f32 %v3505_v42, %v3232_v28  ;;  %v3496_v28 = vadd.f32 %v3495_v32, %v5889_v41  ;;  %p5221_p6 = scmp.ne.s32.totalorder %s4164_s7, %s5220_s13  ;;  %p5226_p8 = scmp.lt.s32.totalorder %s5220_s13, %s5220_s13 }
 0x359   :  { %v3244_v40 = vpop.f32.mrf.mxu0  ;;  %v3507_v16 = vpop.f32.mrf.mxu1  ;;  %4148 = vmatprep.mubr.bf16.mxu1 %v4608_v39 }
 0x35a   :  { %v5899_v57 = vadd.f32 %v3507_v16, %v3234_v43  ;;  %p5227_p9 = por %p5226_p8, %p5225_p7 }
 0x35b   :  { %v3246_v52 = vpop.f32.mrf.mxu0  ;;  %v3509_v7 = vpop.f32.mrf.mxu1 }
 0x35c   :  { %v5901_v35 = vadd.f32 %v3509_v7, %v3236_v61  ;;  %v5967_v61 = vrot.slane %v4006_v44, %v5490_v13  ;;  %p5228_p10 = pnand %p5227_p9, %p5221_p6 }
 0x35d   :  { %v3250_v50 = vpop.f32.mrf.mxu0  ;;  %v3513_v2 = vpop.f32.mrf.mxu1 }
 0x35e   :  { %v5903_v36 = vadd.f32 %v3513_v2, %v3240_v37 }
 0x35f   :  { %v5905_v10 = vpop.f32.mrf.mxu0  ;;  %v3515_v31 = vpop.f32.mrf.mxu1 }
 0x360   :  { %v5907_v46 = vadd.f32 %v3515_v31, %v3242_v12  ;;  %v5975_v12 = vrot.slane %v4006_v44, %v5499_v17 }
 0x361   :  { %v3254_v23 = vpop.f32.mrf.mxu0  ;;  %v3517_v58 = vpop.f32.mrf.mxu1 }
 0x362   :  { %v5909_v62 = vadd.f32 %v3517_v58, %v3244_v40 }
 0x363   :  { %v5911_v53 = vpop.f32.mrf.mxu0  ;;  %v3519_v20 = vpop.f32.mrf.mxu1 }
 0x364   :  { %v5913_v5 = vadd.f32 %v3519_v20, %v3246_v52 }
 0x365   :  { %v5915_v6 = vpop.f32.mrf.mxu0  ;;  %v3523_v8 = vpop.f32.mrf.mxu1 }
 0x366   :  { %v5917_v56 = vadd.f32 %v3523_v8, %v3250_v50  ;;  %v4606_v50 = vld [vmem:[#allocation3] ss:$0 sm:$0xff] }
 0x367   :  { %v5919_v18 = vpop.f32.mrf.mxu0  ;;  %v5921_v38 = vpop.f32.mrf.mxu1  ;;  %4106 = vperm.xlu0 %4681, %v4606_v50  }
 0x369   :  { %v5923_v3 = vpop.f32.mrf.mxu0  ;;  %v3527_v29 = vpop.f32.mrf.mxu1 }
 0x36a   :  { %v5925_v1 = vadd.f32 %v3527_v29, %v3254_v23 }
 0x36b   :  { %v5927_v14 = vpop.f32.mrf.mxu0  ;;  %v5947_v63 = vpop.f32.mrf.mxu1 }
 0x36d   :  { %v5929_v0 = vpop.f32.mrf.mxu0  ;;  %v5953_v60 = vpop.f32.mrf.mxu1 }
 0x36f   :  { %v5931_v27 = vpop.f32.mrf.mxu0  ;;  %v5971_v37 = vpop.f32.mrf.mxu1 }
 0x371   :  { %v5933_v19 = vpop.f32.mrf.mxu0  ;;  %v5978_v40 = vpop.f32.mrf.mxu1 }
 0x373   :  { %v5935_v15 = vpop.f32.mrf.mxu0  ;;  %v5985_v23 = vpop.f32.mrf.mxu1 }
 0x375   :  { %v5937_v54 = vpop.f32.mrf.mxu0 }
 0x377   :  { %v5939_v24 = vpop.f32.mrf.mxu0 }
 0x379   :  { %v5941_v25 = vpop.f32.mrf.mxu0 }
 0x37b   :  { %v5943_v51 = vpop.f32.mrf.mxu0 }
 0x37d   :  { %v5945_v34 = vpop.f32.mrf.mxu0 }
 0x37f   :  { %v5949_v49 = vpop.f32.mrf.mxu0 }
 0x381   :  { %v5951_v48 = vpop.f32.mrf.mxu0 }
 0x383   :  { %v5955_v9 = vpop.f32.mrf.mxu0 }
 0x385   :  { %v3895_v11 = vpop.f32.mrf.mxu0 }
 0x386   :  { %v3974_v43 = vadd.f32 %v3895_v11, %v3494_v26 }
 0x387   :  { %v3897_v30 = vpop.f32.mrf.mxu0 }
 0x388   :  { %v3975_v47 = vadd.f32 %v3897_v30, %v3496_v28  ;;  %v4018_v41 = vadd.f32 %v5967_v61, %v3974_v43  ;;  %v5994_v43 = vpop.f32.mrf.mxu1 }
 0x389   :  { %v3899_v42 = vpop.f32.mrf.mxu0 }
 0x38a   :  { %v3976_v32 = vadd.f32 %v3899_v42, %v3498_v21  ;;  %v4019_v16 = vadd.f32 %v5975_v12, %v3975_v47  ;;  %v4050_v4 = vmax.f32 %v4018_v41, 0.0 }
 0x38b   :  { %v3901_v13 = vpop.f32.mrf.mxu0 }
 0x38c   :  { %v4020_v52 = vadd.f32 %v5967_v61, %v3976_v32  ;;  %v3977_v7 = vadd.f32 %v3901_v13, %v5893_v55  ;;  %v4051_v20 = vmax.f32 %v4019_v16, 0.0  ;;  %v3545_v13 = vpop.f32.mrf.mxu1 }
 0x38d   :  { %v3905_v59 = vpop.f32.mrf.mxu0 }
 0x38e   :  { %v4052_v17 = vmax.f32 %v4020_v52, 0.0  ;;  %v4021_v2 = vadd.f32 %v5975_v12, %v3977_v7  ;;  %v3978_v31 = vadd.f32 %v3905_v59, %v5895_v45 }
 0x38f   :  { %v3907_v58 = vpop.f32.mrf.mxu0 }
 0x390   :  { %v5987_v8 = vpack.c.bf16 %v4052_v17, %v4050_v4  ;;  %v4053_v29 = vmax.f32 %v4021_v2, 0.0  ;;  %v3979_v44 = vadd.f32 %v3907_v58, %v5897_v22  ;;  %v4022_v55 = vadd.f32 %v5967_v61, %v3978_v31  ;;  %v3547_v2 = vpop.f32.mrf.mxu1 }
 0x391   :  { %v3909_v26 = vpop.f32.mrf.mxu0 }
 0x392   :  { %v3980_v11 = vadd.f32 %v3909_v26, %v5899_v57  ;;  %v5992_v28 = vpack.c.bf16 %v4053_v29, %v4051_v20  ;;  %v4023_v45 = vadd.f32 %v5975_v12, %v3979_v44  ;;  %v4054_v42 = vmax.f32 %v4022_v55, 0.0 }
 0x393   :  { %v3911_v39 = vpop.f32.mrf.mxu0  ;;  %v3526_v29 = vadd.f32 %v5921_v38, %v5905_v10 }
 0x394   :  { %v4024_v30 = vadd.f32 %v5967_v61, %v3980_v11  ;;  %v3981_v21 = vadd.f32 %v3911_v39, %v5901_v35  ;;  %v4055_v16 = vmax.f32 %v4023_v45, 0.0  ;;  %v3549_v11 = vpop.f32.mrf.mxu1 }
 0x395   :  { %v3915_v47 = vpop.f32.mrf.mxu0 }
 0x396   :  { %v4056_v41 = vmax.f32 %v4024_v30, 0.0  ;;  %v4025_v22 = vadd.f32 %v5975_v12, %v3981_v21  ;;  %v3982_v32 = vadd.f32 %v3915_v47, %v5903_v36 }
 0x397   :  { %v3917_v57 = vpop.f32.mrf.mxu0 }
 0x398   :  { %v6001_v52 = vpack.c.bf16 %v4056_v41, %v4054_v42  ;;  %v4057_v7 = vmax.f32 %v4025_v22, 0.0  ;;  %v3983_v50 = vadd.f32 %v3917_v57, %v5907_v46  ;;  %v4026_v4 = vadd.f32 %v5967_v61, %v3982_v32  ;;  %v3553_v22 = vpop.f32.mrf.mxu1 }
 0x399   :  { %v3919_v59 = vpop.f32.mrf.mxu0 }
 0x39a   :  { %v3984_v35 = vadd.f32 %v3919_v59, %v5909_v62  ;;  %v6006_v17 = vpack.c.bf16 %v4057_v7, %v4055_v16  ;;  %v4027_v58 = vadd.f32 %v5975_v12, %v3983_v50  ;;  %v4058_v46 = vmax.f32 %v4026_v4, 0.0 }
 0x39b   :  { %v3921_v31 = vpop.f32.mrf.mxu0  ;;  %v3536_v50 = vadd.f32 %v5971_v37, %v5919_v18  ;;  %v3540_v18 = vadd.f32 %v5985_v23, %v5927_v14 }
 0x39c   :  { %v4028_v36 = vadd.f32 %v5967_v61, %v3984_v35  ;;  %v3985_v20 = vadd.f32 %v3921_v31, %v5913_v5  ;;  %v4059_v45 = vmax.f32 %v4027_v58, 0.0  ;;  %v3530_v5 = vadd.f32 %v5947_v63, %v5911_v53  ;;  %v3555_v31 = vpop.f32.mrf.mxu1 }
 0x39d   :  { %v3925_v44 = vpop.f32.mrf.mxu0  ;;  %v3538_v35 = vadd.f32 %v5978_v40, %v5923_v3  ;;  %v3544_v3 = vadd.f32 %v5994_v43, %v5929_v0 }
 0x39e   :  { %v4060_v26 = vmax.f32 %v4028_v36, 0.0  ;;  %v4029_v55 = vadd.f32 %v5975_v12, %v3985_v20  ;;  %v3986_v62 = vadd.f32 %v3925_v44, %v5917_v56  ;;  %v3534_v56 = vadd.f32 %v5953_v60, %v5915_v6 }
 0x39f   :  { %v3927_v39 = vpop.f32.mrf.mxu0 }
 0x3a0   :  { %v6015_v30 = vpack.c.bf16 %v4060_v26, %v4058_v46  ;;  %v4061_v21 = vmax.f32 %v4029_v55, 0.0  ;;  %v3987_v47 = vadd.f32 %v3927_v39, %v3526_v29  ;;  %v4030_v10 = vadd.f32 %v5967_v61, %v3986_v62  ;;  %v3557_v26 = vpop.f32.mrf.mxu1 }
 0x3a1   :  { %v3929_v42 = vpop.f32.mrf.mxu0 }
 0x3a2   :  { %v3988_v38 = vadd.f32 %v3929_v42, %v5925_v1  ;;  %v6021_v41 = vpack.c.bf16 %v4061_v21, %v4059_v45  ;;  %v4031_v57 = vadd.f32 %v5975_v12, %v3987_v47  ;;  %v4062_v63 = vmax.f32 %v4030_v10, 0.0  ;;  %v3559_v10 = vpop.f32.mrf.mxu1 }
 0x3a3   :  { %v3931_v32 = vpop.f32.mrf.mxu0  ;;  %v3546_v45 = vadd.f32 %v3545_v13, %v5931_v27 }
 0x3a4   :  { %v4032_v16 = vadd.f32 %v5967_v61, %v3988_v38  ;;  %v3989_v7 = vadd.f32 %v3931_v32, %v3530_v5  ;;  %v4063_v6 = vmax.f32 %v4031_v57, 0.0  ;;  %v3548_v5 = vadd.f32 %v3547_v2, %v5933_v19 }
 0x3a5   :  { %v3935_v53 = vpop.f32.mrf.mxu0 }
 0x3a6   :  { %v4064_v59 = vmax.f32 %v4032_v16, 0.0  ;;  %v4033_v1 = vadd.f32 %v5975_v12, %v3989_v7  ;;  %v3990_v4 = vadd.f32 %v3935_v53, %v3534_v56  ;;  %v3550_v16 = vadd.f32 %v3549_v11, %v5935_v15 }
 0x3a7   :  { %v3937_v58 = vpop.f32.mrf.mxu0 }
 0x3a8   :  { %v6032_v60 = vpack.c.bf16 %v4064_v59, %v4062_v63  ;;  %v4065_v36 = vmax.f32 %v4033_v1, 0.0  ;;  %v3991_v20 = vadd.f32 %v3937_v58, %v3536_v50  ;;  %v4034_v37 = vadd.f32 %v5967_v61, %v3990_v4  ;;  %v3563_v50 = vpop.f32.mrf.mxu1 }
 0x3a9   :  { %v3939_v29 = vpop.f32.mrf.mxu0  ;;  %v3554_v63 = vadd.f32 %v3553_v22, %v5937_v54  ;;  %v3556_v1 = vadd.f32 %v3555_v31, %v5939_v24 }
 0x3aa   :  { %v3992_v44 = vadd.f32 %v3939_v29, %v3538_v35  ;;  %v6037_v46 = vpack.c.bf16 %v4065_v36, %v4063_v6  ;;  %v4035_v40 = vadd.f32 %v5975_v12, %v3991_v20  ;;  %v4066_v47 = vmax.f32 %v4034_v37, 0.0  ;;  %v3565_v36 = vpop.f32.mrf.mxu1 }
 0x3ab   :  { %v3941_v55 = vpop.f32.mrf.mxu0  ;;  %v3558_v6 = vadd.f32 %v3557_v26, %v5941_v25 }
 0x3ac   :  { %v4036_v62 = vadd.f32 %v5967_v61, %v3992_v44  ;;  %v3993_v39 = vadd.f32 %v3941_v55, %v3540_v18  ;;  %v4067_v32 = vmax.f32 %v4035_v40, 0.0  ;;  %v3560_v44 = vadd.f32 %v3559_v10, %v5943_v51 }
 0x3ad   :  { %v3945_v21 = vpop.f32.mrf.mxu0 }
 0x3ae   :  { %v4068_v14 = vmax.f32 %v4036_v62, 0.0  ;;  %v4037_v23 = vadd.f32 %v5975_v12, %v3993_v39  ;;  %v3994_v42 = vadd.f32 %v3945_v21, %v3544_v3  ;;  %v3567_v3 = vpop.f32.mrf.mxu1  ;;  %v3564_v62 = vadd.f32 %v3563_v50, %v5945_v34 }
 0x3af   :  { %v3947_v38 = vpop.f32.mrf.mxu0 }
 0x3b0   :  { %v6046_v56 = vpack.c.bf16 %v4068_v14, %v4066_v47  ;;  %v4069_v0 = vmax.f32 %v4037_v23, 0.0  ;;  %v3995_v43 = vadd.f32 %v3947_v38, %v3546_v45  ;;  %v4038_v27 = vadd.f32 %v5967_v61, %v3994_v42 }
 0x3b1   :  { %v3949_v57 = vpop.f32.mrf.mxu0  ;;  %v3566_v45 = vadd.f32 %v3565_v36, %v5949_v49  ;;  %v3568_v42 = vadd.f32 %v3567_v3, %v5951_v48 }
 0x3b2   :  { %v3996_v13 = vadd.f32 %v3949_v57, %v3548_v5  ;;  %v6050_v7 = vpack.c.bf16 %v4069_v0, %v4067_v32  ;;  %v4039_v19 = vadd.f32 %v5975_v12, %v3995_v43  ;;  %v4070_v35 = vmax.f32 %v4038_v27, 0.0  ;;  %v3569_v5 = vpop.f32.mrf.mxu1 }
 0x3b3   :  { %v3951_v53 = vpop.f32.mrf.mxu0  ;;  %v3570_v57 = vadd.f32 %v3569_v5, %v5955_v9  ;;  %v4607_v9 = vcombine.low %v5963_v33, %v5963_v33 }
 0x3b4   :  { %v4040_v2 = vadd.f32 %v5967_v61, %v3996_v13  ;;  %v3997_v59 = vadd.f32 %v3951_v53, %v3550_v16  ;;  %v4071_v29 = vmax.f32 %v4039_v19, 0.0 }
 0x3b5   :  { %v3955_v4 = vpop.f32.mrf.mxu0 }
 0x3b6   :  { %v4072_v58 = vmax.f32 %v4040_v2, 0.0  ;;  %v4041_v15 = vadd.f32 %v5975_v12, %v3997_v59  ;;  %v3998_v11 = vadd.f32 %v3955_v4, %v3554_v63 }
 0x3b7   :  { %v3957_v20 = vpop.f32.mrf.mxu0 }
 0x3b8   :  { %v4092_v18 = vpack.c.bf16 %v4072_v58, %v4070_v35  ;;  %v4073_v54 = vmax.f32 %v4041_v15, 0.0  ;;  %v3999_v22 = vadd.f32 %v3957_v20, %v3556_v1  ;;  %v4042_v55 = vadd.f32 %v5967_v61, %v3998_v11 }
 0x3b9   :  { %v3959_v37 = vpop.f32.mrf.mxu0 }
 0x3ba   :  { %v4000_v24 = vadd.f32 %v3959_v37, %v3558_v6  ;;  %v4093_v31 = vpack.c.bf16 %v4073_v54, %v4071_v29  ;;  %v4043_v39 = vadd.f32 %v5975_v12, %v3999_v22  ;;  %v4074_v47 = vmax.f32 %v4042_v55, 0.0 }
 0x3bb   :  { %v3961_v40 = vpop.f32.mrf.mxu0 }
 0x3bc   :  { %v4044_v25 = vadd.f32 %v5967_v61, %v4000_v24  ;;  %v4001_v26 = vadd.f32 %v3961_v40, %v3560_v44  ;;  %v4075_v38 = vmax.f32 %v4043_v39, 0.0 }
 0x3bd   :  { %v3965_v21 = vpop.f32.mrf.mxu0 }
 0x3be   :  { %v4076_v14 = vmax.f32 %v4044_v25, 0.0  ;;  %v4045_v51 = vadd.f32 %v5975_v12, %v4001_v26  ;;  %v4002_v23 = vadd.f32 %v3965_v21, %v3564_v62 }
 0x3bf   :  { %v3967_v10 = vpop.f32.mrf.mxu0 }
 0x3c0   :  { %v4094_v32 = vpack.c.bf16 %v4076_v14, %v4074_v47  ;;  %v4077_v34 = vmax.f32 %v4045_v51, 0.0  ;;  %v4003_v0 = vadd.f32 %v3967_v10, %v3566_v45  ;;  %v4046_v16 = vadd.f32 %v5967_v61, %v4002_v23 }
 0x3c1   :  { %v3969_v43 = vpop.f32.mrf.mxu0 }
 0x3c2   :  { %v4004_v49 = vadd.f32 %v3969_v43, %v3568_v42  ;;  %v4095_v27 = vpack.c.bf16 %v4077_v34, %v4075_v38  ;;  %v4047_v50 = vadd.f32 %v5975_v12, %v4003_v0  ;;  %v4078_v48 = vmax.f32 %v4046_v16, 0.0 }
 0x3c3   :  { %v3971_v13 = vpop.f32.mrf.mxu0 }
 0x3c4   :  { %v4048_v53 = vadd.f32 %v5967_v61, %v4004_v49  ;;  %v4005_v63 = vadd.f32 %v3971_v13, %v3570_v57  ;;  %v4079_v59 = vmax.f32 %v4047_v50, 0.0 }
 0x3c6   :  { %v4080_v19 = vmax.f32 %v4048_v53, 0.0  ;;  %v4049_v2 = vadd.f32 %v5975_v12, %v4005_v63 }
 0x3c8   :  { %v4096_v1 = vpack.c.bf16 %v4080_v19, %v4078_v48  ;;  %v4081_v4 = vmax.f32 %v4049_v2, 0.0 }
 0x3ca   :  { %v4097_v35 = vpack.c.bf16 %v4081_v4, %v4079_v59 }
 0x3cc   :  { %4116 = vmatprep.subr.bf16.mxu1 %v4097_v35 }
 0x3cd   :  { %4117 = vmatpush1.bf16.xpose.msra.mxu1 %v4096_v1 }
 0x3ce   :  { %4118 = vmatprep.subr.bf16.mxu1 %v4095_v27 }
 0x3d5   :  { %4119 = vmatpush1.bf16.xpose.msra.mxu1 %v4094_v32 }
 0x3d6   :  { %4120 = vmatprep.subr.bf16.mxu1 %v4093_v31 }
 0x3dd   :  { %4121 = vmatpush1.bf16.xpose.msra.mxu1 %v4092_v18 }
 0x3de   :  { %4122 = vmatprep.subr.bf16.mxu1 %v6050_v7 }
 0x3e2   :  { %v4107_v61 = vpop.permute.xlu0 %4106 }
 0x3e5   :  { %4123 = vmatpush1.bf16.xpose.msra.mxu1 %v6046_v56 }
 0x3e6   :  { %4124 = vmatprep.subr.bf16.mxu1 %v6037_v46 }
 0x3ed   :  { %4125 = vmatpush1.bf16.xpose.msra.mxu1 %v6032_v60 }
 0x3ee   :  { %4126 = vmatprep.subr.bf16.mxu1 %v6021_v41 }
 0x3f5   :  { %4127 = vmatpush1.bf16.xpose.msra.mxu1 %v6015_v30 }
 0x3f6   :  { %4128 = vmatprep.subr.bf16.mxu1 %v6006_v17 }
 0x3fd   :  { %4129 = vmatpush1.bf16.xpose.msra.mxu1 %v6001_v52 }
 0x3fe   :  { %4130 = vmatprep.subr.bf16.mxu1 %v5992_v28 }
 0x405   :  { %4131 = vmatpush1.bf16.xpose.msra.mxu1 %v5987_v8 }
 0x40c   :  { %4149 = vmatmul.mubr.bf16.vlgmr.msra.gmra.mxu1 %v4607_v9 }
 0x4cc   :  { %v4150_v12 = vpop.f32.mrf.mxu1 }
 0x4cd   :  { %v4151_v60 = vadd.f32 %v4150_v12, %v4107_v61 }
 0x4ce   :  { %v4152_v41 = vpop.f32.mrf.mxu1 }
 0x4cf   :  { %4156 = vst [vmem:[#allocation12] sm:$0xff] %v4151_v60 }
 0x4d0   :  { %v4153_v30 = vpop.f32.mrf.mxu1 }
 0x4d1   :  { %5231 = shalt.err (!%p5228_p10)
}
 0x4d2   :  { %4166 = dma.vmem_to_hbm [thread:$0]  %s4164_s7, 128, %s6095_s9, [#allocation6]   ;;  %v4154_v33 = vpop.f32.mrf.mxu1 }
 0x4d3   :  { %5246 = dma.done.wait [#allocation6], 128  }
 0x4d4   :  { %5247 = vsyncadd [#allocation6], 4294967168 }
 0x4d5   :  { %4170 = vsyncpa [#allocation5], 1 }
 0x4d6   :  { %4171 = vsyncpa [#allocation8], 1 }
 0x4d7   :  { %4172 = vsyncpa [#allocation11], 1 }
 0x4d8   :  { %4173 = vsyncpa [#allocation6], 1 }

</bundles_post_ra>
